<compile_context>
chip_gen: v7x
topology: tpu7x:2x2x1
jax: 0.10.0
libtpu: 0.0.40
codegen_flags: <defaults>
</compile_context>

<pallas_src>
import jax
import jax.numpy as jnp
import numpy as np
from jax.experimental import pallas as pl
from jax.experimental.pallas import tpu as pltpu

VOCAB = 50       # vocab_size
EMB = 16         # embedding_size
HID = 32         # hidden_state_size
BATCH = 2
SEQ = 8

B_PAD = 8        # pad batch to the f32 sublane count
OUT_LANES = 128  # lane-dense output width (== 4*HID)


def lstm_kernel(ints_ref, w_ref, b_ref, out_ref):
    H = HID
    f32, bf16 = jnp.float32, jnp.bfloat16
    T = SEQ
    TB = T * B_PAD

    # ---- unpack the packed operands with static, tile-aligned slices (hoisted loads) ----
    emb_pj = w_ref[0:64, :]          # (64, 4H)  embedding @ W_ih0 (vocab padded 50->64)
    w_hh0 = w_ref[64:96, :]          # (32, 4H)
    w_hh1 = w_ref[96:128, :]         # (32, 4H)
    w_ih1 = w_ref[128:160, :]        # (32, 4H)
    w_out = w_ref[160:192, :]        # (32, 128) padded head (pad cols exactly 0)
    b0 = b_ref[0:1, :]                                           # (1, 4H) f32
    b1b = jnp.broadcast_to(b_ref[1:2, :], (B_PAD, 4 * H))        # pre-broadcast once
    b_out = b_ref[2:3, :]                                        # (1, 128) f32, -1e30 pads

    tok = ints_ref[0:TB, :]             # (T*B, 1) int32, time-major tokens
    lens = ints_ref[TB:TB + B_PAD, :]   # (B, 1)   int32 lengths

    # ---- fused embedding lookup + layer-0 input projection (+ b0): one batched MXU op
    #      for ALL T steps, before the recurrence (off the critical path) ----
    vocab_iota = jax.lax.broadcasted_iota(jnp.int32, (TB, 64), 1)
    onehot = jnp.where(vocab_iota == tok, 1.0, 0.0).astype(bf16)           # (T*B, 64)
    gx0 = jnp.dot(onehot, emb_pj, preferred_element_type=f32) + b0         # (T*B, 4H)

    # ---- hoisted lane constants: single-tanh gate formulation ----
    # sigmoid(x) = 0.5*tanh(0.5*x) + 0.5.  With sc = 0.5 on i/f/o lanes and 1.0 on g lanes:
    #   gates(pre) = tanh(pre*sc)*sc + off   -> ONE EUP tanh per 128-lane gate vreg.
    lane = jax.lax.broadcasted_iota(jnp.int32, (B_PAD, 4 * H), 1)
    is_g = (lane >= 2 * H) & (lane < 3 * H)
    sc = jnp.where(is_g, 1.0, 0.5).astype(f32)
    off = jnp.where(is_g, 0.0, 0.5).astype(f32)

    def gates(pre):
        return jnp.tanh(pre * sc) * sc + off

    def cell_update(a, c_prev):
        i, f = a[:, 0:H], a[:, H:2 * H]
        g, o = a[:, 2 * H:3 * H], a[:, 3 * H:4 * H]
        c_new = f * c_prev + i * g
        h_new = o * jnp.tanh(c_new)
        return h_new, c_new

    zero = jnp.zeros((B_PAD, H), f32)
    h0, c0, h1, c1, last = zero, zero, zero, zero, zero

    # Block-diagonal recurrent-dot fusion (review item for v6e/v7x) deliberately skipped:
    # the per-step [h0|h1] repack would couple both layer chains onto one serial path.
    for t in range(T):  # static unroll (T=8): straight-line code, state lives in vregs
        # layer-1 recurrent half first: depends only on h1(t-1) -> overlaps layer-0 below
        g1_rec = jnp.dot(h1.astype(bf16), w_hh1, preferred_element_type=f32) + b1b

        # ---- LSTM layer 0 (input projection precomputed; one recurrent dot) ----
        g0 = gx0[t * B_PAD:(t + 1) * B_PAD, :] + jnp.dot(
            h0.astype(bf16), w_hh0, preferred_element_type=f32)
        h0, c0 = cell_update(gates(g0), c0)

        # ---- LSTM layer 1 (critical-path half) ----
        g1 = g1_rec + jnp.dot(h0.astype(bf16), w_ih1, preferred_element_type=f32)
        h1, c1 = cell_update(gates(g1), c1)

        # ---- record the top-layer output at each row's last valid step ----
        # (rows whose length never equals t+1 — padded rows or a zero-length input —
        #  keep last=0 and return softmax(b_out); padded rows are sliced off by the wrapper)
        last = jnp.where(lens == (t + 1), h1, last)

    # ---- linear head + softmax, lane-dense (8,128) output ----
    # pad classes carry logit -1e30 -> exp underflows to 0, so the 128-lane softmax equals
    # the 2-class softmax.  Denominator via the approximate-reciprocal EUP path.
    logits = jnp.dot(last.astype(bf16), w_out, preferred_element_type=f32) + b_out
    m = jnp.max(logits, axis=1, keepdims=True)
    e = jnp.exp(logits - m)
    s = jnp.sum(e, axis=1, keepdims=True)
    out_ref[...] = e * pl.reciprocal(s, approx=True)


def prepare_kernel_params(params):
    """Offline layout/dtype prep: fold embedding into W_ih0, pack all MXU weights into one
    bf16 array and all biases into one f32 array (3 kernel inputs instead of 11)."""
    f32, bf16 = jnp.float32, jnp.bfloat16
    H = HID
    # Fold the embedding lookup into the layer-0 input projection:
    #   x_t @ W_ih0 == (embedding @ W_ih0)[token]
    emb_proj = params["embedding"] @ params["w_ih0"]                 # (VOCAB, 4H) f32

    # Packed bf16 weights; every sublane offset is a multiple of the bf16 tile (16):
    #   rows   0: 64  fused embedding*W_ih0 table (vocab padded 50 -> 64)
    #   rows  64: 96  W_hh0
    #   rows  96:128  W_hh1
    #   rows 128:160  W_ih1
    #   rows 160:192  W_out padded to 128 output lanes (pad columns exactly 0)
    W = jnp.zeros((192, 4 * H), f32)
    W = W.at[0:VOCAB, :].set(emb_proj)
    W = W.at[64:96, :].set(params["w_hh0"])
    W = W.at[96:128, :].set(params["w_hh1"])
    W = W.at[128:160, :].set(params["w_ih1"])
    W = W.at[160:192, 0:2].set(params["w_out"])

    # Packed f32 biases (never cast to bf16 — the -1e30 pad logits must stay f32):
    #   row 0 = b0, row 1 = b1, row 2 = b_out padded with -1e30
    Bz = jnp.zeros((3, 4 * H), f32)
    Bz = Bz.at[0, :].set(params["b0"][0])
    Bz = Bz.at[1, :].set(params["b1"][0])
    Bz = Bz.at[2, :].set(jnp.full((4 * H,), -1e30, f32).at[:2].set(params["b_out"][0]))

    return {"weights": W.astype(bf16), "biases": Bz}


def lstm_sentiment_forward(tokens, lengths, kp):
    B, T = tokens.shape
    # tiny int32 layout prep only: time-major token column + lengths, merged into ONE input
    tok_p = jnp.zeros((B_PAD, T), jnp.int32).at[:B, :].set(tokens.astype(jnp.int32))
    tok_col = jnp.transpose(tok_p, (1, 0)).reshape(T * B_PAD, 1)
    len_col = jnp.zeros((B_PAD, 1), jnp.int32).at[:B, 0].set(lengths.astype(jnp.int32))
    ints = jnp.concatenate([tok_col, len_col], axis=0)        # (T*B_PAD + B_PAD, 1)

    vspec = pl.BlockSpec(memory_space=pltpu.MemorySpace.VMEM)
    out = pl.pallas_call(
        lstm_kernel,
        out_shape=jax.ShapeDtypeStruct((B_PAD, OUT_LANES), jnp.float32),
        in_specs=[vspec] * 3,
        out_specs=vspec,
    )(ints, kp["weights"], kp["biases"])
    return out[:B, :2]


def reference_forward(tokens, lengths, params):
    """Pure-JAX reference mirroring the PyTorch forward.  The layer-0 input projection uses
    the mathematically identical fused table (embedding @ W_ih0)[token]; the table and the
    recurrent/output matmul operands are cast to bf16 (f32 accumulate) to match the kernel's
    MXU operand precision.  Gate nonlinearities use jax.nn.sigmoid / jnp.tanh, so this also
    validates the kernel's single-tanh sigmoid formulation."""
    bf16 = jnp.bfloat16
    H = HID
    B, T = tokens.shape
    emb_proj = (params["embedding"] @ params["w_ih0"]).astype(bf16).astype(jnp.float32)
    x_proj = emb_proj[tokens]                              # (B, T, 4H)  == x_t @ W_ih0
    w_hh0 = params["w_hh0"].astype(bf16)
    w_ih1 = params["w_ih1"].astype(bf16)
    w_hh1 = params["w_hh1"].astype(bf16)
    w_out = params["w_out"].astype(bf16)

    def dot(a, w):
        return jnp.dot(a.astype(bf16), w, preferred_element_type=jnp.float32)

    h0 = jnp.zeros((B, H)); c0 = jnp.zeros((B, H))
    h1 = jnp.zeros((B, H)); c1 = jnp.zeros((B, H))
    last = jnp.zeros((B, H))
    for t in range(T):
        g0 = x_proj[:, t, :] + dot(h0, w_hh0) + params["b0"]
        i0 = jax.nn.sigmoid(g0[:, 0:H]); f0 = jax.nn.sigmoid(g0[:, H:2*H])
        gg0 = jnp.tanh(g0[:, 2*H:3*H]); o0 = jax.nn.sigmoid(g0[:, 3*H:4*H])
        c0 = f0 * c0 + i0 * gg0; h0 = o0 * jnp.tanh(c0)
        g1 = dot(h0, w_ih1) + dot(h1, w_hh1) + params["b1"]
        i1 = jax.nn.sigmoid(g1[:, 0:H]); f1 = jax.nn.sigmoid(g1[:, H:2*H])
        gg1 = jnp.tanh(g1[:, 2*H:3*H]); o1 = jax.nn.sigmoid(g1[:, 3*H:4*H])
        c1 = f1 * c1 + i1 * gg1; h1 = o1 * jnp.tanh(c1)
        last = jnp.where((lengths == (t + 1)).reshape(B, 1), h1, last)
    logits = dot(last, w_out) + params["b_out"]
    return jax.nn.softmax(logits, axis=1)


def init_params(key):
    ks = jax.random.split(key, 12)
    s = 0.1
    # PyTorch stores LSTM weights as (4H, in); kept pre-transposed to (in, 4H); gate order i,f,g,o.
    return {
        "embedding": jax.random.normal(ks[0], (VOCAB, EMB), jnp.float32),
        "w_ih0": s * jax.random.normal(ks[1], (EMB, 4 * HID), jnp.float32),
        "w_hh0": s * jax.random.normal(ks[2], (HID, 4 * HID), jnp.float32),
        # b0 = b_ih_l0 + b_hh_l0 folded together, shape (1, 4H)
        "b0": s * jax.random.normal(ks[3], (1, 4 * HID), jnp.float32),
        "w_ih1": s * jax.random.normal(ks[4], (HID, 4 * HID), jnp.float32),
        "w_hh1": s * jax.random.normal(ks[5], (HID, 4 * HID), jnp.float32),
        "b1": s * jax.random.normal(ks[6], (1, 4 * HID), jnp.float32),
        "w_out": s * jax.random.normal(ks[7], (HID, 2), jnp.float32),
        "b_out": s * jax.random.normal(ks[8], (1, 2), jnp.float32),
    }


if __name__ == "__main__":
    key = jax.random.PRNGKey(0)
    pkey, tkey = jax.random.split(key)
    params = init_params(pkey)
    kparams = prepare_kernel_params(params)

    # TODO(synk): PackedSequence pack/unpack bookkeeping has no Pallas equivalent;
    # replaced with padded tokens + explicit lengths (mathematically identical output).
    tokens = jax.random.randint(tkey, (BATCH, SEQ), 0, VOCAB, dtype=jnp.int32)
    lengths = jnp.array([SEQ, 5], dtype=jnp.int32)

    fwd = jax.jit(lstm_sentiment_forward)
    pred = jax.block_until_ready(fwd(tokens, lengths, kparams))

    ref = reference_forward(tokens, lengths, params)
    np.testing.assert_allclose(np.asarray(pred), np.asarray(ref), atol=2e-3, rtol=2e-3)
    assert pred.shape == (BATCH, 2)

    print("KERNEL_OK")
</pallas_src>

<mosaic_0001>
module attributes {stable_mosaic.version = 11 : i64} {
  func.func @lstm_kernel(%arg0: memref<72x1xi32, #tpu.memory_space<vmem>>, %arg1: memref<192x128xbf16, #tpu.memory_space<vmem>>, %arg2: memref<3x128xf32, #tpu.memory_space<vmem>>, %arg3: memref<8x128xf32, #tpu.memory_space<vmem>>) attributes {dimension_semantics = [], scalar_prefetch = 0 : i64, scratch_operands = 0 : i64, tpu.core_type = #tpu.core_type<tc>} {
    %c0 = arith.constant 0 : index
    %c0_0 = arith.constant 0 : index
    %0 = vector.load %arg1[%c0, %c0_0] : memref<192x128xbf16, #tpu.memory_space<vmem>>, vector<64x128xbf16>
    %c64 = arith.constant 64 : index
    %c0_1 = arith.constant 0 : index
    %1 = vector.load %arg1[%c64, %c0_1] : memref<192x128xbf16, #tpu.memory_space<vmem>>, vector<32x128xbf16>
    %c96 = arith.constant 96 : index
    %c0_2 = arith.constant 0 : index
    %2 = vector.load %arg1[%c96, %c0_2] : memref<192x128xbf16, #tpu.memory_space<vmem>>, vector<32x128xbf16>
    %c128 = arith.constant 128 : index
    %c0_3 = arith.constant 0 : index
    %3 = vector.load %arg1[%c128, %c0_3] : memref<192x128xbf16, #tpu.memory_space<vmem>>, vector<32x128xbf16>
    %c160 = arith.constant 160 : index
    %c0_4 = arith.constant 0 : index
    %4 = vector.load %arg1[%c160, %c0_4] : memref<192x128xbf16, #tpu.memory_space<vmem>>, vector<32x128xbf16>
    %c0_5 = arith.constant 0 : index
    %c0_6 = arith.constant 0 : index
    %5 = vector.load %arg2[%c0_5, %c0_6] : memref<3x128xf32, #tpu.memory_space<vmem>>, vector<1x128xf32>
    %c1 = arith.constant 1 : index
    %c0_7 = arith.constant 0 : index
    %6 = vector.load %arg2[%c1, %c0_7] : memref<3x128xf32, #tpu.memory_space<vmem>>, vector<1x128xf32>
    %7 = vector.shape_cast %6 : vector<1x128xf32> to vector<1x128xf32>
    %8 = vector.broadcast %7 : vector<1x128xf32> to vector<8x128xf32>
    %c2 = arith.constant 2 : index
    %c0_8 = arith.constant 0 : index
    %9 = vector.load %arg2[%c2, %c0_8] : memref<3x128xf32, #tpu.memory_space<vmem>>, vector<1x128xf32>
    %c0_9 = arith.constant 0 : index
    %c0_10 = arith.constant 0 : index
    %10 = vector.load %arg0[%c0_9, %c0_10] : memref<72x1xi32, #tpu.memory_space<vmem>>, vector<64x1xi32>
    %c64_11 = arith.constant 64 : index
    %c0_12 = arith.constant 0 : index
    %11 = vector.load %arg0[%c64_11, %c0_12] : memref<72x1xi32, #tpu.memory_space<vmem>>, vector<8x1xi32>
    %12 = tpu.iota {dimensions = array<i32: 1>} : vector<64x64xi32>
    %13 = vector.broadcast %10 : vector<64x1xi32> to vector<64x64xi32>
    %14 = arith.cmpi eq, %12, %13 : vector<64x64xi32>
    %cst = arith.constant 1.000000e+00 : f32
    %cst_13 = arith.constant 0.000000e+00 : f32
    %15 = vector.broadcast %cst : f32 to vector<64x64xf32>
    %16 = vector.broadcast %cst_13 : f32 to vector<64x64xf32>
    %17 = arith.select %14, %15, %16 : vector<64x64xi1>, vector<64x64xf32>
    %18 = arith.truncf %17 : vector<64x64xf32> to vector<64x64xbf16>
    %cst_14 = arith.constant dense<0.000000e+00> : vector<64x128xf32>
    %19 = tpu.matmul %18, %0, %cst_14 {dimension_numbers = #tpu.dot_dimension_numbers<[1], [0], [0], [1], [0, 0, 1, 1], [], []>} : vector<64x64xbf16>, vector<64x128xbf16>, vector<64x128xf32> -> vector<64x128xf32>
    %20 = vector.broadcast %5 : vector<1x128xf32> to vector<64x128xf32>
    %21 = arith.addf %19, %20 : vector<64x128xf32>
    %22 = tpu.iota {dimensions = array<i32: 1>} : vector<8x128xi32>
    %c64_i32 = arith.constant 64 : i32
    %23 = vector.broadcast %c64_i32 : i32 to vector<8x128xi32>
    %24 = arith.cmpi sge, %22, %23 : vector<8x128xi32>
    %c96_i32 = arith.constant 96 : i32
    %25 = vector.broadcast %c96_i32 : i32 to vector<8x128xi32>
    %26 = arith.cmpi slt, %22, %25 : vector<8x128xi32>
    %27 = arith.andi %24, %26 : vector<8x128xi1>
    %cst_15 = arith.constant 1.000000e+00 : f32
    %cst_16 = arith.constant 5.000000e-01 : f32
    %28 = vector.broadcast %cst_15 : f32 to vector<8x128xf32>
    %29 = vector.broadcast %cst_16 : f32 to vector<8x128xf32>
    %30 = arith.select %27, %28, %29 : vector<8x128xi1>, vector<8x128xf32>
    %cst_17 = arith.constant 0.000000e+00 : f32
    %cst_18 = arith.constant 5.000000e-01 : f32
    %31 = vector.broadcast %cst_17 : f32 to vector<8x128xf32>
    %32 = vector.broadcast %cst_18 : f32 to vector<8x128xf32>
    %33 = arith.select %27, %31, %32 : vector<8x128xi1>, vector<8x128xf32>
    %cst_19 = arith.constant 0.000000e+00 : f32
    %34 = vector.broadcast %cst_19 : f32 to vector<8x32xf32>
    %35 = arith.truncf %34 : vector<8x32xf32> to vector<8x32xbf16>
    %cst_20 = arith.constant dense<0.000000e+00> : vector<8x128xf32>
    %36 = tpu.matmul %35, %2, %cst_20 {dimension_numbers = #tpu.dot_dimension_numbers<[1], [0], [0], [1], [0, 0, 1, 1], [], []>} : vector<8x32xbf16>, vector<32x128xbf16>, vector<8x128xf32> -> vector<8x128xf32>
    %37 = arith.addf %36, %8 : vector<8x128xf32>
    %38 = vector.extract_strided_slice %21 {offsets = [0, 0], sizes = [8, 128], strides = [1, 1]} : vector<64x128xf32> to vector<8x128xf32>
    %39 = arith.truncf %34 : vector<8x32xf32> to vector<8x32xbf16>
    %cst_21 = arith.constant dense<0.000000e+00> : vector<8x128xf32>
    %40 = tpu.matmul %39, %1, %cst_21 {dimension_numbers = #tpu.dot_dimension_numbers<[1], [0], [0], [1], [0, 0, 1, 1], [], []>} : vector<8x32xbf16>, vector<32x128xbf16>, vector<8x128xf32> -> vector<8x128xf32>
    %41 = arith.addf %38, %40 : vector<8x128xf32>
    %42 = arith.mulf %41, %30 : vector<8x128xf32>
    %43 = math.tanh %42 : vector<8x128xf32>
    %44 = arith.mulf %43, %30 : vector<8x128xf32>
    %45 = arith.addf %44, %33 : vector<8x128xf32>
    %46 = vector.extract_strided_slice %45 {offsets = [0, 0], sizes = [8, 32], strides = [1, 1]} : vector<8x128xf32> to vector<8x32xf32>
    %47 = vector.extract_strided_slice %45 {offsets = [0, 32], sizes = [8, 32], strides = [1, 1]} : vector<8x128xf32> to vector<8x32xf32>
    %48 = vector.extract_strided_slice %45 {offsets = [0, 64], sizes = [8, 32], strides = [1, 1]} : vector<8x128xf32> to vector<8x32xf32>
    %49 = vector.extract_strided_slice %45 {offsets = [0, 96], sizes = [8, 32], strides = [1, 1]} : vector<8x128xf32> to vector<8x32xf32>
    %50 = arith.mulf %47, %34 : vector<8x32xf32>
    %51 = arith.mulf %46, %48 : vector<8x32xf32>
    %52 = arith.addf %50, %51 : vector<8x32xf32>
    %53 = math.tanh %52 : vector<8x32xf32>
    %54 = arith.mulf %49, %53 : vector<8x32xf32>
    %55 = arith.truncf %54 : vector<8x32xf32> to vector<8x32xbf16>
    %cst_22 = arith.constant dense<0.000000e+00> : vector<8x128xf32>
    %56 = tpu.matmul %55, %3, %cst_22 {dimension_numbers = #tpu.dot_dimension_numbers<[1], [0], [0], [1], [0, 0, 1, 1], [], []>} : vector<8x32xbf16>, vector<32x128xbf16>, vector<8x128xf32> -> vector<8x128xf32>
    %57 = arith.addf %37, %56 : vector<8x128xf32>
    %58 = arith.mulf %57, %30 : vector<8x128xf32>
    %59 = math.tanh %58 : vector<8x128xf32>
    %60 = arith.mulf %59, %30 : vector<8x128xf32>
    %61 = arith.addf %60, %33 : vector<8x128xf32>
    %62 = vector.extract_strided_slice %61 {offsets = [0, 0], sizes = [8, 32], strides = [1, 1]} : vector<8x128xf32> to vector<8x32xf32>
    %63 = vector.extract_strided_slice %61 {offsets = [0, 32], sizes = [8, 32], strides = [1, 1]} : vector<8x128xf32> to vector<8x32xf32>
    %64 = vector.extract_strided_slice %61 {offsets = [0, 64], sizes = [8, 32], strides = [1, 1]} : vector<8x128xf32> to vector<8x32xf32>
    %65 = vector.extract_strided_slice %61 {offsets = [0, 96], sizes = [8, 32], strides = [1, 1]} : vector<8x128xf32> to vector<8x32xf32>
    %66 = arith.mulf %63, %34 : vector<8x32xf32>
    %67 = arith.mulf %62, %64 : vector<8x32xf32>
    %68 = arith.addf %66, %67 : vector<8x32xf32>
    %69 = math.tanh %68 : vector<8x32xf32>
    %70 = arith.mulf %65, %69 : vector<8x32xf32>
    %c1_i32 = arith.constant 1 : i32
    %71 = vector.broadcast %c1_i32 : i32 to vector<8x1xi32>
    %72 = arith.cmpi eq, %11, %71 : vector<8x1xi32>
    %73 = vector.shape_cast %72 : vector<8x1xi1> to vector<8x1xi1>
    %74 = vector.broadcast %73 : vector<8x1xi1> to vector<8x32xi1>
    %75 = arith.select %74, %70, %34 : vector<8x32xi1>, vector<8x32xf32>
    %76 = arith.truncf %70 : vector<8x32xf32> to vector<8x32xbf16>
    %cst_23 = arith.constant dense<0.000000e+00> : vector<8x128xf32>
    %77 = tpu.matmul %76, %2, %cst_23 {dimension_numbers = #tpu.dot_dimension_numbers<[1], [0], [0], [1], [0, 0, 1, 1], [], []>} : vector<8x32xbf16>, vector<32x128xbf16>, vector<8x128xf32> -> vector<8x128xf32>
    %78 = arith.addf %77, %8 : vector<8x128xf32>
    %79 = vector.extract_strided_slice %21 {offsets = [8, 0], sizes = [8, 128], strides = [1, 1]} : vector<64x128xf32> to vector<8x128xf32>
    %80 = arith.truncf %54 : vector<8x32xf32> to vector<8x32xbf16>
    %cst_24 = arith.constant dense<0.000000e+00> : vector<8x128xf32>
    %81 = tpu.matmul %80, %1, %cst_24 {dimension_numbers = #tpu.dot_dimension_numbers<[1], [0], [0], [1], [0, 0, 1, 1], [], []>} : vector<8x32xbf16>, vector<32x128xbf16>, vector<8x128xf32> -> vector<8x128xf32>
    %82 = arith.addf %79, %81 : vector<8x128xf32>
    %83 = arith.mulf %82, %30 : vector<8x128xf32>
    %84 = math.tanh %83 : vector<8x128xf32>
    %85 = arith.mulf %84, %30 : vector<8x128xf32>
    %86 = arith.addf %85, %33 : vector<8x128xf32>
    %87 = vector.extract_strided_slice %86 {offsets = [0, 0], sizes = [8, 32], strides = [1, 1]} : vector<8x128xf32> to vector<8x32xf32>
    %88 = vector.extract_strided_slice %86 {offsets = [0, 32], sizes = [8, 32], strides = [1, 1]} : vector<8x128xf32> to vector<8x32xf32>
    %89 = vector.extract_strided_slice %86 {offsets = [0, 64], sizes = [8, 32], strides = [1, 1]} : vector<8x128xf32> to vector<8x32xf32>
    %90 = vector.extract_strided_slice %86 {offsets = [0, 96], sizes = [8, 32], strides = [1, 1]} : vector<8x128xf32> to vector<8x32xf32>
    %91 = arith.mulf %88, %52 : vector<8x32xf32>
    %92 = arith.mulf %87, %89 : vector<8x32xf32>
    %93 = arith.addf %91, %92 : vector<8x32xf32>
    %94 = math.tanh %93 : vector<8x32xf32>
    %95 = arith.mulf %90, %94 : vector<8x32xf32>
    %96 = arith.truncf %95 : vector<8x32xf32> to vector<8x32xbf16>
    %cst_25 = arith.constant dense<0.000000e+00> : vector<8x128xf32>
    %97 = tpu.matmul %96, %3, %cst_25 {dimension_numbers = #tpu.dot_dimension_numbers<[1], [0], [0], [1], [0, 0, 1, 1], [], []>} : vector<8x32xbf16>, vector<32x128xbf16>, vector<8x128xf32> -> vector<8x128xf32>
    %98 = arith.addf %78, %97 : vector<8x128xf32>
    %99 = arith.mulf %98, %30 : vector<8x128xf32>
    %100 = math.tanh %99 : vector<8x128xf32>
    %101 = arith.mulf %100, %30 : vector<8x128xf32>
    %102 = arith.addf %101, %33 : vector<8x128xf32>
    %103 = vector.extract_strided_slice %102 {offsets = [0, 0], sizes = [8, 32], strides = [1, 1]} : vector<8x128xf32> to vector<8x32xf32>
    %104 = vector.extract_strided_slice %102 {offsets = [0, 32], sizes = [8, 32], strides = [1, 1]} : vector<8x128xf32> to vector<8x32xf32>
    %105 = vector.extract_strided_slice %102 {offsets = [0, 64], sizes = [8, 32], strides = [1, 1]} : vector<8x128xf32> to vector<8x32xf32>
    %106 = vector.extract_strided_slice %102 {offsets = [0, 96], sizes = [8, 32], strides = [1, 1]} : vector<8x128xf32> to vector<8x32xf32>
    %107 = arith.mulf %104, %68 : vector<8x32xf32>
    %108 = arith.mulf %103, %105 : vector<8x32xf32>
    %109 = arith.addf %107, %108 : vector<8x32xf32>
    %110 = math.tanh %109 : vector<8x32xf32>
    %111 = arith.mulf %106, %110 : vector<8x32xf32>
    %c2_i32 = arith.constant 2 : i32
    %112 = vector.broadcast %c2_i32 : i32 to vector<8x1xi32>
    %113 = arith.cmpi eq, %11, %112 : vector<8x1xi32>
    %114 = vector.shape_cast %113 : vector<8x1xi1> to vector<8x1xi1>
    %115 = vector.broadcast %114 : vector<8x1xi1> to vector<8x32xi1>
    %116 = arith.select %115, %111, %75 : vector<8x32xi1>, vector<8x32xf32>
    %117 = arith.truncf %111 : vector<8x32xf32> to vector<8x32xbf16>
    %cst_26 = arith.constant dense<0.000000e+00> : vector<8x128xf32>
    %118 = tpu.matmul %117, %2, %cst_26 {dimension_numbers = #tpu.dot_dimension_numbers<[1], [0], [0], [1], [0, 0, 1, 1], [], []>} : vector<8x32xbf16>, vector<32x128xbf16>, vector<8x128xf32> -> vector<8x128xf32>
    %119 = arith.addf %118, %8 : vector<8x128xf32>
    %120 = vector.extract_strided_slice %21 {offsets = [16, 0], sizes = [8, 128], strides = [1, 1]} : vector<64x128xf32> to vector<8x128xf32>
    %121 = arith.truncf %95 : vector<8x32xf32> to vector<8x32xbf16>
    %cst_27 = arith.constant dense<0.000000e+00> : vector<8x128xf32>
    %122 = tpu.matmul %121, %1, %cst_27 {dimension_numbers = #tpu.dot_dimension_numbers<[1], [0], [0], [1], [0, 0, 1, 1], [], []>} : vector<8x32xbf16>, vector<32x128xbf16>, vector<8x128xf32> -> vector<8x128xf32>
    %123 = arith.addf %120, %122 : vector<8x128xf32>
    %124 = arith.mulf %123, %30 : vector<8x128xf32>
    %125 = math.tanh %124 : vector<8x128xf32>
    %126 = arith.mulf %125, %30 : vector<8x128xf32>
    %127 = arith.addf %126, %33 : vector<8x128xf32>
    %128 = vector.extract_strided_slice %127 {offsets = [0, 0], sizes = [8, 32], strides = [1, 1]} : vector<8x128xf32> to vector<8x32xf32>
    %129 = vector.extract_strided_slice %127 {offsets = [0, 32], sizes = [8, 32], strides = [1, 1]} : vector<8x128xf32> to vector<8x32xf32>
    %130 = vector.extract_strided_slice %127 {offsets = [0, 64], sizes = [8, 32], strides = [1, 1]} : vector<8x128xf32> to vector<8x32xf32>
    %131 = vector.extract_strided_slice %127 {offsets = [0, 96], sizes = [8, 32], strides = [1, 1]} : vector<8x128xf32> to vector<8x32xf32>
    %132 = arith.mulf %129, %93 : vector<8x32xf32>
    %133 = arith.mulf %128, %130 : vector<8x32xf32>
    %134 = arith.addf %132, %133 : vector<8x32xf32>
    %135 = math.tanh %134 : vector<8x32xf32>
    %136 = arith.mulf %131, %135 : vector<8x32xf32>
    %137 = arith.truncf %136 : vector<8x32xf32> to vector<8x32xbf16>
    %cst_28 = arith.constant dense<0.000000e+00> : vector<8x128xf32>
    %138 = tpu.matmul %137, %3, %cst_28 {dimension_numbers = #tpu.dot_dimension_numbers<[1], [0], [0], [1], [0, 0, 1, 1], [], []>} : vector<8x32xbf16>, vector<32x128xbf16>, vector<8x128xf32> -> vector<8x128xf32>
    %139 = arith.addf %119, %138 : vector<8x128xf32>
    %140 = arith.mulf %139, %30 : vector<8x128xf32>
    %141 = math.tanh %140 : vector<8x128xf32>
    %142 = arith.mulf %141, %30 : vector<8x128xf32>
    %143 = arith.addf %142, %33 : vector<8x128xf32>
    %144 = vector.extract_strided_slice %143 {offsets = [0, 0], sizes = [8, 32], strides = [1, 1]} : vector<8x128xf32> to vector<8x32xf32>
    %145 = vector.extract_strided_slice %143 {offsets = [0, 32], sizes = [8, 32], strides = [1, 1]} : vector<8x128xf32> to vector<8x32xf32>
    %146 = vector.extract_strided_slice %143 {offsets = [0, 64], sizes = [8, 32], strides = [1, 1]} : vector<8x128xf32> to vector<8x32xf32>
    %147 = vector.extract_strided_slice %143 {offsets = [0, 96], sizes = [8, 32], strides = [1, 1]} : vector<8x128xf32> to vector<8x32xf32>
    %148 = arith.mulf %145, %109 : vector<8x32xf32>
    %149 = arith.mulf %144, %146 : vector<8x32xf32>
    %150 = arith.addf %148, %149 : vector<8x32xf32>
    %151 = math.tanh %150 : vector<8x32xf32>
    %152 = arith.mulf %147, %151 : vector<8x32xf32>
    %c3_i32 = arith.constant 3 : i32
    %153 = vector.broadcast %c3_i32 : i32 to vector<8x1xi32>
    %154 = arith.cmpi eq, %11, %153 : vector<8x1xi32>
    %155 = vector.shape_cast %154 : vector<8x1xi1> to vector<8x1xi1>
    %156 = vector.broadcast %155 : vector<8x1xi1> to vector<8x32xi1>
    %157 = arith.select %156, %152, %116 : vector<8x32xi1>, vector<8x32xf32>
    %158 = arith.truncf %152 : vector<8x32xf32> to vector<8x32xbf16>
    %cst_29 = arith.constant dense<0.000000e+00> : vector<8x128xf32>
    %159 = tpu.matmul %158, %2, %cst_29 {dimension_numbers = #tpu.dot_dimension_numbers<[1], [0], [0], [1], [0, 0, 1, 1], [], []>} : vector<8x32xbf16>, vector<32x128xbf16>, vector<8x128xf32> -> vector<8x128xf32>
    %160 = arith.addf %159, %8 : vector<8x128xf32>
    %161 = vector.extract_strided_slice %21 {offsets = [24, 0], sizes = [8, 128], strides = [1, 1]} : vector<64x128xf32> to vector<8x128xf32>
    %162 = arith.truncf %136 : vector<8x32xf32> to vector<8x32xbf16>
    %cst_30 = arith.constant dense<0.000000e+00> : vector<8x128xf32>
    %163 = tpu.matmul %162, %1, %cst_30 {dimension_numbers = #tpu.dot_dimension_numbers<[1], [0], [0], [1], [0, 0, 1, 1], [], []>} : vector<8x32xbf16>, vector<32x128xbf16>, vector<8x128xf32> -> vector<8x128xf32>
    %164 = arith.addf %161, %163 : vector<8x128xf32>
    %165 = arith.mulf %164, %30 : vector<8x128xf32>
    %166 = math.tanh %165 : vector<8x128xf32>
    %167 = arith.mulf %166, %30 : vector<8x128xf32>
    %168 = arith.addf %167, %33 : vector<8x128xf32>
    %169 = vector.extract_strided_slice %168 {offsets = [0, 0], sizes = [8, 32], strides = [1, 1]} : vector<8x128xf32> to vector<8x32xf32>
    %170 = vector.extract_strided_slice %168 {offsets = [0, 32], sizes = [8, 32], strides = [1, 1]} : vector<8x128xf32> to vector<8x32xf32>
    %171 = vector.extract_strided_slice %168 {offsets = [0, 64], sizes = [8, 32], strides = [1, 1]} : vector<8x128xf32> to vector<8x32xf32>
    %172 = vector.extract_strided_slice %168 {offsets = [0, 96], sizes = [8, 32], strides = [1, 1]} : vector<8x128xf32> to vector<8x32xf32>
    %173 = arith.mulf %170, %134 : vector<8x32xf32>
    %174 = arith.mulf %169, %171 : vector<8x32xf32>
    %175 = arith.addf %173, %174 : vector<8x32xf32>
    %176 = math.tanh %175 : vector<8x32xf32>
    %177 = arith.mulf %172, %176 : vector<8x32xf32>
    %178 = arith.truncf %177 : vector<8x32xf32> to vector<8x32xbf16>
    %cst_31 = arith.constant dense<0.000000e+00> : vector<8x128xf32>
    %179 = tpu.matmul %178, %3, %cst_31 {dimension_numbers = #tpu.dot_dimension_numbers<[1], [0], [0], [1], [0, 0, 1, 1], [], []>} : vector<8x32xbf16>, vector<32x128xbf16>, vector<8x128xf32> -> vector<8x128xf32>
    %180 = arith.addf %160, %179 : vector<8x128xf32>
    %181 = arith.mulf %180, %30 : vector<8x128xf32>
    %182 = math.tanh %181 : vector<8x128xf32>
    %183 = arith.mulf %182, %30 : vector<8x128xf32>
    %184 = arith.addf %183, %33 : vector<8x128xf32>
    %185 = vector.extract_strided_slice %184 {offsets = [0, 0], sizes = [8, 32], strides = [1, 1]} : vector<8x128xf32> to vector<8x32xf32>
    %186 = vector.extract_strided_slice %184 {offsets = [0, 32], sizes = [8, 32], strides = [1, 1]} : vector<8x128xf32> to vector<8x32xf32>
    %187 = vector.extract_strided_slice %184 {offsets = [0, 64], sizes = [8, 32], strides = [1, 1]} : vector<8x128xf32> to vector<8x32xf32>
    %188 = vector.extract_strided_slice %184 {offsets = [0, 96], sizes = [8, 32], strides = [1, 1]} : vector<8x128xf32> to vector<8x32xf32>
    %189 = arith.mulf %186, %150 : vector<8x32xf32>
    %190 = arith.mulf %185, %187 : vector<8x32xf32>
    %191 = arith.addf %189, %190 : vector<8x32xf32>
    %192 = math.tanh %191 : vector<8x32xf32>
    %193 = arith.mulf %188, %192 : vector<8x32xf32>
    %c4_i32 = arith.constant 4 : i32
    %194 = vector.broadcast %c4_i32 : i32 to vector<8x1xi32>
    %195 = arith.cmpi eq, %11, %194 : vector<8x1xi32>
    %196 = vector.shape_cast %195 : vector<8x1xi1> to vector<8x1xi1>
    %197 = vector.broadcast %196 : vector<8x1xi1> to vector<8x32xi1>
    %198 = arith.select %197, %193, %157 : vector<8x32xi1>, vector<8x32xf32>
    %199 = arith.truncf %193 : vector<8x32xf32> to vector<8x32xbf16>
    %cst_32 = arith.constant dense<0.000000e+00> : vector<8x128xf32>
    %200 = tpu.matmul %199, %2, %cst_32 {dimension_numbers = #tpu.dot_dimension_numbers<[1], [0], [0], [1], [0, 0, 1, 1], [], []>} : vector<8x32xbf16>, vector<32x128xbf16>, vector<8x128xf32> -> vector<8x128xf32>
    %201 = arith.addf %200, %8 : vector<8x128xf32>
    %202 = vector.extract_strided_slice %21 {offsets = [32, 0], sizes = [8, 128], strides = [1, 1]} : vector<64x128xf32> to vector<8x128xf32>
    %203 = arith.truncf %177 : vector<8x32xf32> to vector<8x32xbf16>
    %cst_33 = arith.constant dense<0.000000e+00> : vector<8x128xf32>
    %204 = tpu.matmul %203, %1, %cst_33 {dimension_numbers = #tpu.dot_dimension_numbers<[1], [0], [0], [1], [0, 0, 1, 1], [], []>} : vector<8x32xbf16>, vector<32x128xbf16>, vector<8x128xf32> -> vector<8x128xf32>
    %205 = arith.addf %202, %204 : vector<8x128xf32>
    %206 = arith.mulf %205, %30 : vector<8x128xf32>
    %207 = math.tanh %206 : vector<8x128xf32>
    %208 = arith.mulf %207, %30 : vector<8x128xf32>
    %209 = arith.addf %208, %33 : vector<8x128xf32>
    %210 = vector.extract_strided_slice %209 {offsets = [0, 0], sizes = [8, 32], strides = [1, 1]} : vector<8x128xf32> to vector<8x32xf32>
    %211 = vector.extract_strided_slice %209 {offsets = [0, 32], sizes = [8, 32], strides = [1, 1]} : vector<8x128xf32> to vector<8x32xf32>
    %212 = vector.extract_strided_slice %209 {offsets = [0, 64], sizes = [8, 32], strides = [1, 1]} : vector<8x128xf32> to vector<8x32xf32>
    %213 = vector.extract_strided_slice %209 {offsets = [0, 96], sizes = [8, 32], strides = [1, 1]} : vector<8x128xf32> to vector<8x32xf32>
    %214 = arith.mulf %211, %175 : vector<8x32xf32>
    %215 = arith.mulf %210, %212 : vector<8x32xf32>
    %216 = arith.addf %214, %215 : vector<8x32xf32>
    %217 = math.tanh %216 : vector<8x32xf32>
    %218 = arith.mulf %213, %217 : vector<8x32xf32>
    %219 = arith.truncf %218 : vector<8x32xf32> to vector<8x32xbf16>
    %cst_34 = arith.constant dense<0.000000e+00> : vector<8x128xf32>
    %220 = tpu.matmul %219, %3, %cst_34 {dimension_numbers = #tpu.dot_dimension_numbers<[1], [0], [0], [1], [0, 0, 1, 1], [], []>} : vector<8x32xbf16>, vector<32x128xbf16>, vector<8x128xf32> -> vector<8x128xf32>
    %221 = arith.addf %201, %220 : vector<8x128xf32>
    %222 = arith.mulf %221, %30 : vector<8x128xf32>
    %223 = math.tanh %222 : vector<8x128xf32>
    %224 = arith.mulf %223, %30 : vector<8x128xf32>
    %225 = arith.addf %224, %33 : vector<8x128xf32>
    %226 = vector.extract_strided_slice %225 {offsets = [0, 0], sizes = [8, 32], strides = [1, 1]} : vector<8x128xf32> to vector<8x32xf32>
    %227 = vector.extract_strided_slice %225 {offsets = [0, 32], sizes = [8, 32], strides = [1, 1]} : vector<8x128xf32> to vector<8x32xf32>
    %228 = vector.extract_strided_slice %225 {offsets = [0, 64], sizes = [8, 32], strides = [1, 1]} : vector<8x128xf32> to vector<8x32xf32>
    %229 = vector.extract_strided_slice %225 {offsets = [0, 96], sizes = [8, 32], strides = [1, 1]} : vector<8x128xf32> to vector<8x32xf32>
    %230 = arith.mulf %227, %191 : vector<8x32xf32>
    %231 = arith.mulf %226, %228 : vector<8x32xf32>
    %232 = arith.addf %230, %231 : vector<8x32xf32>
    %233 = math.tanh %232 : vector<8x32xf32>
    %234 = arith.mulf %229, %233 : vector<8x32xf32>
    %c5_i32 = arith.constant 5 : i32
    %235 = vector.broadcast %c5_i32 : i32 to vector<8x1xi32>
    %236 = arith.cmpi eq, %11, %235 : vector<8x1xi32>
    %237 = vector.shape_cast %236 : vector<8x1xi1> to vector<8x1xi1>
    %238 = vector.broadcast %237 : vector<8x1xi1> to vector<8x32xi1>
    %239 = arith.select %238, %234, %198 : vector<8x32xi1>, vector<8x32xf32>
    %240 = arith.truncf %234 : vector<8x32xf32> to vector<8x32xbf16>
    %cst_35 = arith.constant dense<0.000000e+00> : vector<8x128xf32>
    %241 = tpu.matmul %240, %2, %cst_35 {dimension_numbers = #tpu.dot_dimension_numbers<[1], [0], [0], [1], [0, 0, 1, 1], [], []>} : vector<8x32xbf16>, vector<32x128xbf16>, vector<8x128xf32> -> vector<8x128xf32>
    %242 = arith.addf %241, %8 : vector<8x128xf32>
    %243 = vector.extract_strided_slice %21 {offsets = [40, 0], sizes = [8, 128], strides = [1, 1]} : vector<64x128xf32> to vector<8x128xf32>
    %244 = arith.truncf %218 : vector<8x32xf32> to vector<8x32xbf16>
    %cst_36 = arith.constant dense<0.000000e+00> : vector<8x128xf32>
    %245 = tpu.matmul %244, %1, %cst_36 {dimension_numbers = #tpu.dot_dimension_numbers<[1], [0], [0], [1], [0, 0, 1, 1], [], []>} : vector<8x32xbf16>, vector<32x128xbf16>, vector<8x128xf32> -> vector<8x128xf32>
    %246 = arith.addf %243, %245 : vector<8x128xf32>
    %247 = arith.mulf %246, %30 : vector<8x128xf32>
    %248 = math.tanh %247 : vector<8x128xf32>
    %249 = arith.mulf %248, %30 : vector<8x128xf32>
    %250 = arith.addf %249, %33 : vector<8x128xf32>
    %251 = vector.extract_strided_slice %250 {offsets = [0, 0], sizes = [8, 32], strides = [1, 1]} : vector<8x128xf32> to vector<8x32xf32>
    %252 = vector.extract_strided_slice %250 {offsets = [0, 32], sizes = [8, 32], strides = [1, 1]} : vector<8x128xf32> to vector<8x32xf32>
    %253 = vector.extract_strided_slice %250 {offsets = [0, 64], sizes = [8, 32], strides = [1, 1]} : vector<8x128xf32> to vector<8x32xf32>
    %254 = vector.extract_strided_slice %250 {offsets = [0, 96], sizes = [8, 32], strides = [1, 1]} : vector<8x128xf32> to vector<8x32xf32>
    %255 = arith.mulf %252, %216 : vector<8x32xf32>
    %256 = arith.mulf %251, %253 : vector<8x32xf32>
    %257 = arith.addf %255, %256 : vector<8x32xf32>
    %258 = math.tanh %257 : vector<8x32xf32>
    %259 = arith.mulf %254, %258 : vector<8x32xf32>
    %260 = arith.truncf %259 : vector<8x32xf32> to vector<8x32xbf16>
    %cst_37 = arith.constant dense<0.000000e+00> : vector<8x128xf32>
    %261 = tpu.matmul %260, %3, %cst_37 {dimension_numbers = #tpu.dot_dimension_numbers<[1], [0], [0], [1], [0, 0, 1, 1], [], []>} : vector<8x32xbf16>, vector<32x128xbf16>, vector<8x128xf32> -> vector<8x128xf32>
    %262 = arith.addf %242, %261 : vector<8x128xf32>
    %263 = arith.mulf %262, %30 : vector<8x128xf32>
    %264 = math.tanh %263 : vector<8x128xf32>
    %265 = arith.mulf %264, %30 : vector<8x128xf32>
    %266 = arith.addf %265, %33 : vector<8x128xf32>
    %267 = vector.extract_strided_slice %266 {offsets = [0, 0], sizes = [8, 32], strides = [1, 1]} : vector<8x128xf32> to vector<8x32xf32>
    %268 = vector.extract_strided_slice %266 {offsets = [0, 32], sizes = [8, 32], strides = [1, 1]} : vector<8x128xf32> to vector<8x32xf32>
    %269 = vector.extract_strided_slice %266 {offsets = [0, 64], sizes = [8, 32], strides = [1, 1]} : vector<8x128xf32> to vector<8x32xf32>
    %270 = vector.extract_strided_slice %266 {offsets = [0, 96], sizes = [8, 32], strides = [1, 1]} : vector<8x128xf32> to vector<8x32xf32>
    %271 = arith.mulf %268, %232 : vector<8x32xf32>
    %272 = arith.mulf %267, %269 : vector<8x32xf32>
    %273 = arith.addf %271, %272 : vector<8x32xf32>
    %274 = math.tanh %273 : vector<8x32xf32>
    %275 = arith.mulf %270, %274 : vector<8x32xf32>
    %c6_i32 = arith.constant 6 : i32
    %276 = vector.broadcast %c6_i32 : i32 to vector<8x1xi32>
    %277 = arith.cmpi eq, %11, %276 : vector<8x1xi32>
    %278 = vector.shape_cast %277 : vector<8x1xi1> to vector<8x1xi1>
    %279 = vector.broadcast %278 : vector<8x1xi1> to vector<8x32xi1>
    %280 = arith.select %279, %275, %239 : vector<8x32xi1>, vector<8x32xf32>
    %281 = arith.truncf %275 : vector<8x32xf32> to vector<8x32xbf16>
    %cst_38 = arith.constant dense<0.000000e+00> : vector<8x128xf32>
    %282 = tpu.matmul %281, %2, %cst_38 {dimension_numbers = #tpu.dot_dimension_numbers<[1], [0], [0], [1], [0, 0, 1, 1], [], []>} : vector<8x32xbf16>, vector<32x128xbf16>, vector<8x128xf32> -> vector<8x128xf32>
    %283 = arith.addf %282, %8 : vector<8x128xf32>
    %284 = vector.extract_strided_slice %21 {offsets = [48, 0], sizes = [8, 128], strides = [1, 1]} : vector<64x128xf32> to vector<8x128xf32>
    %285 = arith.truncf %259 : vector<8x32xf32> to vector<8x32xbf16>
    %cst_39 = arith.constant dense<0.000000e+00> : vector<8x128xf32>
    %286 = tpu.matmul %285, %1, %cst_39 {dimension_numbers = #tpu.dot_dimension_numbers<[1], [0], [0], [1], [0, 0, 1, 1], [], []>} : vector<8x32xbf16>, vector<32x128xbf16>, vector<8x128xf32> -> vector<8x128xf32>
    %287 = arith.addf %284, %286 : vector<8x128xf32>
    %288 = arith.mulf %287, %30 : vector<8x128xf32>
    %289 = math.tanh %288 : vector<8x128xf32>
    %290 = arith.mulf %289, %30 : vector<8x128xf32>
    %291 = arith.addf %290, %33 : vector<8x128xf32>
    %292 = vector.extract_strided_slice %291 {offsets = [0, 0], sizes = [8, 32], strides = [1, 1]} : vector<8x128xf32> to vector<8x32xf32>
    %293 = vector.extract_strided_slice %291 {offsets = [0, 32], sizes = [8, 32], strides = [1, 1]} : vector<8x128xf32> to vector<8x32xf32>
    %294 = vector.extract_strided_slice %291 {offsets = [0, 64], sizes = [8, 32], strides = [1, 1]} : vector<8x128xf32> to vector<8x32xf32>
    %295 = vector.extract_strided_slice %291 {offsets = [0, 96], sizes = [8, 32], strides = [1, 1]} : vector<8x128xf32> to vector<8x32xf32>
    %296 = arith.mulf %293, %257 : vector<8x32xf32>
    %297 = arith.mulf %292, %294 : vector<8x32xf32>
    %298 = arith.addf %296, %297 : vector<8x32xf32>
    %299 = math.tanh %298 : vector<8x32xf32>
    %300 = arith.mulf %295, %299 : vector<8x32xf32>
    %301 = arith.truncf %300 : vector<8x32xf32> to vector<8x32xbf16>
    %cst_40 = arith.constant dense<0.000000e+00> : vector<8x128xf32>
    %302 = tpu.matmul %301, %3, %cst_40 {dimension_numbers = #tpu.dot_dimension_numbers<[1], [0], [0], [1], [0, 0, 1, 1], [], []>} : vector<8x32xbf16>, vector<32x128xbf16>, vector<8x128xf32> -> vector<8x128xf32>
    %303 = arith.addf %283, %302 : vector<8x128xf32>
    %304 = arith.mulf %303, %30 : vector<8x128xf32>
    %305 = math.tanh %304 : vector<8x128xf32>
    %306 = arith.mulf %305, %30 : vector<8x128xf32>
    %307 = arith.addf %306, %33 : vector<8x128xf32>
    %308 = vector.extract_strided_slice %307 {offsets = [0, 0], sizes = [8, 32], strides = [1, 1]} : vector<8x128xf32> to vector<8x32xf32>
    %309 = vector.extract_strided_slice %307 {offsets = [0, 32], sizes = [8, 32], strides = [1, 1]} : vector<8x128xf32> to vector<8x32xf32>
    %310 = vector.extract_strided_slice %307 {offsets = [0, 64], sizes = [8, 32], strides = [1, 1]} : vector<8x128xf32> to vector<8x32xf32>
    %311 = vector.extract_strided_slice %307 {offsets = [0, 96], sizes = [8, 32], strides = [1, 1]} : vector<8x128xf32> to vector<8x32xf32>
    %312 = arith.mulf %309, %273 : vector<8x32xf32>
    %313 = arith.mulf %308, %310 : vector<8x32xf32>
    %314 = arith.addf %312, %313 : vector<8x32xf32>
    %315 = math.tanh %314 : vector<8x32xf32>
    %316 = arith.mulf %311, %315 : vector<8x32xf32>
    %c7_i32 = arith.constant 7 : i32
    %317 = vector.broadcast %c7_i32 : i32 to vector<8x1xi32>
    %318 = arith.cmpi eq, %11, %317 : vector<8x1xi32>
    %319 = vector.shape_cast %318 : vector<8x1xi1> to vector<8x1xi1>
    %320 = vector.broadcast %319 : vector<8x1xi1> to vector<8x32xi1>
    %321 = arith.select %320, %316, %280 : vector<8x32xi1>, vector<8x32xf32>
    %322 = arith.truncf %316 : vector<8x32xf32> to vector<8x32xbf16>
    %cst_41 = arith.constant dense<0.000000e+00> : vector<8x128xf32>
    %323 = tpu.matmul %322, %2, %cst_41 {dimension_numbers = #tpu.dot_dimension_numbers<[1], [0], [0], [1], [0, 0, 1, 1], [], []>} : vector<8x32xbf16>, vector<32x128xbf16>, vector<8x128xf32> -> vector<8x128xf32>
    %324 = arith.addf %323, %8 : vector<8x128xf32>
    %325 = vector.extract_strided_slice %21 {offsets = [56, 0], sizes = [8, 128], strides = [1, 1]} : vector<64x128xf32> to vector<8x128xf32>
    %326 = arith.truncf %300 : vector<8x32xf32> to vector<8x32xbf16>
    %cst_42 = arith.constant dense<0.000000e+00> : vector<8x128xf32>
    %327 = tpu.matmul %326, %1, %cst_42 {dimension_numbers = #tpu.dot_dimension_numbers<[1], [0], [0], [1], [0, 0, 1, 1], [], []>} : vector<8x32xbf16>, vector<32x128xbf16>, vector<8x128xf32> -> vector<8x128xf32>
    %328 = arith.addf %325, %327 : vector<8x128xf32>
    %329 = arith.mulf %328, %30 : vector<8x128xf32>
    %330 = math.tanh %329 : vector<8x128xf32>
    %331 = arith.mulf %330, %30 : vector<8x128xf32>
    %332 = arith.addf %331, %33 : vector<8x128xf32>
    %333 = vector.extract_strided_slice %332 {offsets = [0, 0], sizes = [8, 32], strides = [1, 1]} : vector<8x128xf32> to vector<8x32xf32>
    %334 = vector.extract_strided_slice %332 {offsets = [0, 32], sizes = [8, 32], strides = [1, 1]} : vector<8x128xf32> to vector<8x32xf32>
    %335 = vector.extract_strided_slice %332 {offsets = [0, 64], sizes = [8, 32], strides = [1, 1]} : vector<8x128xf32> to vector<8x32xf32>
    %336 = vector.extract_strided_slice %332 {offsets = [0, 96], sizes = [8, 32], strides = [1, 1]} : vector<8x128xf32> to vector<8x32xf32>
    %337 = arith.mulf %334, %298 : vector<8x32xf32>
    %338 = arith.mulf %333, %335 : vector<8x32xf32>
    %339 = arith.addf %337, %338 : vector<8x32xf32>
    %340 = math.tanh %339 : vector<8x32xf32>
    %341 = arith.mulf %336, %340 : vector<8x32xf32>
    %342 = arith.truncf %341 : vector<8x32xf32> to vector<8x32xbf16>
    %cst_43 = arith.constant dense<0.000000e+00> : vector<8x128xf32>
    %343 = tpu.matmul %342, %3, %cst_43 {dimension_numbers = #tpu.dot_dimension_numbers<[1], [0], [0], [1], [0, 0, 1, 1], [], []>} : vector<8x32xbf16>, vector<32x128xbf16>, vector<8x128xf32> -> vector<8x128xf32>
    %344 = arith.addf %324, %343 : vector<8x128xf32>
    %345 = arith.mulf %344, %30 : vector<8x128xf32>
    %346 = math.tanh %345 : vector<8x128xf32>
    %347 = arith.mulf %346, %30 : vector<8x128xf32>
    %348 = arith.addf %347, %33 : vector<8x128xf32>
    %349 = vector.extract_strided_slice %348 {offsets = [0, 0], sizes = [8, 32], strides = [1, 1]} : vector<8x128xf32> to vector<8x32xf32>
    %350 = vector.extract_strided_slice %348 {offsets = [0, 32], sizes = [8, 32], strides = [1, 1]} : vector<8x128xf32> to vector<8x32xf32>
    %351 = vector.extract_strided_slice %348 {offsets = [0, 64], sizes = [8, 32], strides = [1, 1]} : vector<8x128xf32> to vector<8x32xf32>
    %352 = vector.extract_strided_slice %348 {offsets = [0, 96], sizes = [8, 32], strides = [1, 1]} : vector<8x128xf32> to vector<8x32xf32>
    %353 = arith.mulf %350, %314 : vector<8x32xf32>
    %354 = arith.mulf %349, %351 : vector<8x32xf32>
    %355 = arith.addf %353, %354 : vector<8x32xf32>
    %356 = math.tanh %355 : vector<8x32xf32>
    %357 = arith.mulf %352, %356 : vector<8x32xf32>
    %c8_i32 = arith.constant 8 : i32
    %358 = vector.broadcast %c8_i32 : i32 to vector<8x1xi32>
    %359 = arith.cmpi eq, %11, %358 : vector<8x1xi32>
    %360 = vector.shape_cast %359 : vector<8x1xi1> to vector<8x1xi1>
    %361 = vector.broadcast %360 : vector<8x1xi1> to vector<8x32xi1>
    %362 = arith.select %361, %357, %321 : vector<8x32xi1>, vector<8x32xf32>
    %363 = arith.truncf %362 : vector<8x32xf32> to vector<8x32xbf16>
    %cst_44 = arith.constant dense<0.000000e+00> : vector<8x128xf32>
    %364 = tpu.matmul %363, %4, %cst_44 {dimension_numbers = #tpu.dot_dimension_numbers<[1], [0], [0], [1], [0, 0, 1, 1], [], []>} : vector<8x32xbf16>, vector<32x128xbf16>, vector<8x128xf32> -> vector<8x128xf32>
    %365 = vector.broadcast %9 : vector<1x128xf32> to vector<8x128xf32>
    %366 = arith.addf %364, %365 : vector<8x128xf32>
    %cst_45 = arith.constant dense<0xFF800000> : vector<8xf32>
    %367 = vector.multi_reduction <maximumf>, %366, %cst_45 [1] : vector<8x128xf32> to vector<8xf32>
    %368 = vector.shape_cast %367 : vector<8xf32> to vector<8x1xf32>
    %369 = vector.broadcast %368 : vector<8x1xf32> to vector<8x128xf32>
    %370 = arith.subf %366, %369 : vector<8x128xf32>
    %371 = math.exp %370 : vector<8x128xf32>
    %cst_46 = arith.constant dense<0.000000e+00> : vector<8xf32>
    %372 = vector.multi_reduction <add>, %371, %cst_46 [1] : vector<8x128xf32> to vector<8xf32>
    %373 = vector.shape_cast %372 : vector<8xf32> to vector<8x1xf32>
    %374 = tpu.reciprocal %373 {approx = true} : vector<8x1xf32> -> vector<8x1xf32>
    %375 = vector.broadcast %374 : vector<8x1xf32> to vector<8x128xf32>
    %376 = arith.mulf %371, %375 : vector<8x128xf32>
    %c0_47 = arith.constant 0 : index
    %c0_48 = arith.constant 0 : index
    %377 = vector.load %arg3[%c0_47, %c0_48] : memref<8x128xf32, #tpu.memory_space<vmem>>, vector<8x128xf32>
    tpu.vector_store %arg3[%c0_47, %c0_48], %376 {strides = array<i32>} : memref<8x128xf32, #tpu.memory_space<vmem>>, vector<8x128xf32>,
    return
  }
}

</mosaic_0001>

<bundles_post_ra>
// kernel: lstm_sentiment_forward.1
= control target key start
LH: loop header
LB: loop body
LE: loop exit
PB: predicated region body
PF: predicated region fallthrough
CT: control target
= control target key end

     0   :  { %v2275_v0 = vmov 0   ;;  %v2276_v6 = vmov 0.0   ;;  %vm2277_vm0 = vmmov 0   ;;  %v55_v14 = vlaneseq  ;;  %s2279_s11 = smov 64   ;;  %s2280_s12 = smov 32   ;;  %s2844_s0 = inlined_call_operand.vmem [shape: s32[72,1], index: 0, kind: input, shape index: {}]   ;;  %s2845_s1 = inlined_call_operand.vmem [shape: bf16[192,128], index: 1, kind: input, shape index: {}]   ;;  %s2846_s2 = inlined_call_operand.vmem [shape: f32[3,128], index: 2, kind: input, shape index: {}]   ;;  %s2847_s3 = inlined_call_operand.vmem [shape: f32[8,128], index: 3, kind: output, shape index: {}]  }
   0x1   :  { %2190 = vset.pattern.permute.xlu1 %v2275_v0  ;;  %2189 = vset.pattern.permute.xlu0 %v2275_v0  ;;  %v48_v1 = vld [vmem:[%s2844_s0 + $0x10] sm:$0xff]  ;;  %v46_v2 = vld [vmem:[%s2844_s0] sm:$0xff]  ;;  %v49_v3 = vld [vmem:[%s2844_s0 + $0x18] sm:$0xff]  ;;  %vm129_vm5 = vcmask 523264   ;;  %v2278_v35 = vmov 0.5   ;;  %vm224_vm9 = vcmask 261120  }
   0x2   :  { %64 = vperm.xlu1 %2190, %v48_v1   ;;  %58 = vperm.xlu0 %2189, %v46_v2   ;;  %v47_v4 = vld [vmem:[%s2844_s0 + $0x8] sm:$0xff]  ;;  %v2191_v5 = vld [vmem:[%s2845_s1] sm:$0xff]   ;;  %v2324_v7 = vld [vmem:[%s2845_s1 + $0x30] sm:$0xff]   ;;  %v2365_v15 = vand.u32 127, %v55_v14 }
   0x3   :  { %1943 = vmatprep.subr.bf16.mxu1 %v2276_v6  ;;  %1947 = vmatprep.mubr.msk.bf16.mxu1 %vm2277_vm0, %v2276_v6  ;;  %v2193_v8 = vld [vmem:[%s2845_s1 + $0x8] sm:$0xff]   ;;  %v2333_v9 = vld [vmem:[%s2845_s1 + $0x38] sm:$0xff]   ;;  %v2195_v10 = vld [vmem:[%s2845_s1 + $0x10] sm:$0xff]  }
   0x4   :  { %1927 = vmatprep.subr.bf16.mxu0 %v2191_v5  ;;  %1944 = vmatpush3.bf16.msra.mxu1 %v2324_v7  ;;  %v2342_v11 = vld [vmem:[%s2845_s1 + $0x20] sm:$0xff]   ;;  %v2197_v12 = vld [vmem:[%s2845_s1 + $0x18] sm:$0xff]   ;;  %v2354_v13 = vld [vmem:[%s2845_s1 + $0x28] sm:$0xff]   ;;  %vm207_vm6 = vcmp.ge.s32.totalorder %v2365_v15, 64  ;;  %vm208_vm7 = vcmp.lt.s32.totalorder %v2365_v15, 96 }
   0x5   :  { %1928 = vmatpush3.bf16.msra.mxu0 %v2191_v5  ;;  %1945 = vmatprep.subr.bf16.mxu1 %v2276_v6  ;;  %v2386_v30 = vld [vmem:[%s2846_s2] ss:$0 sm:$0xff]  ;;  %vm209_vm8 = vmand %vm207_vm6, %vm208_vm7  ;;  %v2411_v50 = vld [vmem:[%s2845_s1 + $0x48] sm:$0xff]  }
   0x6   :  { %67 = vperm.xlu1 %2190, %v49_v3   ;;  %61 = vperm.xlu0 %2189, %v47_v4   ;;  %v2393_v36 = vsel %vm209_vm8, 1.0, %v2278_v35  ;;  %v2396_v41 = vsel %vm209_vm8, 0.0, %v2278_v35  ;;  %v2405_v49 = vld [vmem:[%s2845_s1 + $0x40] sm:$0xff]  }
   0x7   :  { %1929 = vmatprep.subr.bf16.mxu0 %v2193_v8  ;;  %v2435_v56 = vld [vmem:[%s2846_s2 + $0x1] ss:$0 sm:$0xff] }
   0x8   :  { %1946 = vmatpush3.bf16.msra.mxu1 %v2333_v9 }
   0x9   :  { %1930 = vmatpush3.bf16.msra.mxu0 %v2193_v8  ;;  %1951 = vmatprep.subr.bf16.mxu1 %v2276_v6 }
   0xa   :  { %1931 = vmatprep.subr.bf16.mxu0 %v2195_v10 }
   0xb   :  { %1948 = vmatmul.mubr.bf16.vlgmr.msra.gmra.mrb[0].mxu1 %v2275_v0 }
   0xc   :  { %1952 = vmatpush3.bf16.msra.mxu1 %v2342_v11  ;;  %1955 = vmatprep.mubr.msk.bf16.mxu1 %vm2277_vm0, %v2276_v6 }
   0xd   :  { %1932 = vmatpush3.bf16.msra.mxu0 %v2195_v10  ;;  %1953 = vmatprep.subr.bf16.mxu1 %v2276_v6 }
   0xe   :  { %1933 = vmatprep.subr.bf16.mxu0 %v2197_v12 }
  0x10   :  { %1954 = vmatpush3.bf16.msra.mxu1 %v2354_v13 }
  0x11   :  { %1934 = vmatpush3.bf16.msra.mxu0 %v2197_v12  ;;  %1959 = vmatprep.subr.bf16.mxu1 %v2276_v6 }
  0x12   :  { %1967 = vmatprep.subr.bf16.mxu0 %v2276_v6 }
  0x13   :  { %1956 = vmatmul.mubr.bf16.vlgmr.msra.gmra.mrb[4].mxu1 %v2275_v0 }
  0x14   :  { %1963 = vmatprep.mubr.msk.bf16.mxu1 %vm2277_vm0, %v2276_v6  ;;  %1960 = vmatpush3.bf16.msra.mxu1 %v2405_v49 }
  0x15   :  { %1961 = vmatprep.subr.bf16.mxu1 %v2276_v6 }
  0x18   :  { %1962 = vmatpush3.bf16.msra.mxu1 %v2411_v50 }
  0x19   :  { %1975 = vmatprep.subr.bf16.mxu1 %v2276_v6 }
  0x81   :  { %v65_v16 = vpop.permute.xlu1 %64  ;;  %v59_v17 = vpop.permute.xlu0 %58 }
  0x82   :  { %vm83_vm1 = vcmp.eq.s32.totalorder %v2365_v15, %v65_v16  ;;  %vm81_vm2 = vcmp.eq.s32.totalorder %v2365_v15, %v59_v17 }
  0x83   :  { %v91_v20 = vsel %vm83_vm1, 1.0, %v2276_v6  ;;  %v89_v21 = vsel %vm81_vm2, 1.0, %v2276_v6 }
  0x85   :  { %v68_v18 = vpop.permute.xlu1 %67  ;;  %v62_v19 = vpop.permute.xlu0 %61 }
  0x86   :  { %vm84_vm3 = vcmp.eq.s32.totalorder %v2365_v15, %v68_v18  ;;  %vm82_vm4 = vcmp.eq.s32.totalorder %v2365_v15, %v62_v19 }
  0x87   :  { %v92_v22 = vsel %vm84_vm3, 1.0, %v2276_v6  ;;  %v90_v23 = vsel %vm82_vm4, 1.0, %v2276_v6 }
  0x88   :  { %v98_v24 = vpack.c.bf16 %v92_v22, %v91_v20  ;;  %v97_v25 = vpack.c.bf16 %v90_v23, %v89_v21 }
  0x8a   :  { %1935 = vmatprep.mubr.msk.bf16.mxu0 %vm129_vm5, %v97_v25 }
  0x8b   :  { %1936 = vmatmul.mubr.msk.bf16.vlgmr.msra.gmra.mrb[0].mxu0 %vm129_vm5, %v98_v24 }
  0x8c   :  { %1968 = vmatpush3.bf16.msra.mxu0 %v2324_v7 }
  0x8d   :  { %1969 = vmatprep.subr.bf16.mxu0 %v2276_v6 }
  0x90   :  { %1970 = vmatpush3.bf16.msra.mxu0 %v2333_v9 }
  0x91   :  { %1983 = vmatprep.subr.bf16.mxu0 %v2276_v6 }
  0xe6   :  { %v314_v26 = vpop.f32.mrb[4].mxu1 }
  0xe7   :  { %v1957_v27 = vpop.f32.mrb[5].mxu1 }
  0xe8   :  { %v317_v28 = vpop.f32.mrb[6].mxu1 }
  0xe9   :  { %v1958_v29 = vpop.f32.mrb[7].mxu1 }
 0x15e   :  { %v2388_v31 = vpop.f32.mrb[0].mxu0 }
 0x15f   :  { %v176_v32 = vpop.f32.mrb[1].mxu0 }
 0x160   :  { %v177_v33 = vadd.f32 %v2386_v30, %v176_v32  ;;  %v2391_v34 = vpop.f32.mrb[2].mxu0  ;;  %v50_v32 = vld [vmem:[%s2844_s0 + $0x20] sm:$0xff] }
 0x161   :  { %v179_v37 = vpop.f32.mrb[3].mxu0 }
 0x162   :  { %v320_v38 = vadd.f32 %v314_v26, %v177_v33  ;;  %v180_v63 = vadd.f32 %v2386_v30, %v179_v37  ;;  %v52_v33 = vld [vmem:[%s2844_s0 + $0x30] sm:$0xff]  ;;  %v51_v37 = vld [vmem:[%s2844_s0 + $0x28] sm:$0xff] }
 0x164   :  { %v321_v39 = vmul.f32 %v320_v38, %v2393_v36  ;;  %v53_v38 = vld [vmem:[%s2844_s0 + $0x38] sm:$0xff] }
 0x166   :  { %2203 = vtanh.f32 %v321_v39 }
 0x170   :  { %v2204_v40 = vpop.eup %2203 }
 0x171   :  { %v323_v42 = vmul.f32 %v2204_v40, %v2393_v36 }
 0x173   :  { %v324_v43 = vadd.f32 %v323_v42, %v2396_v41 }
 0x175   :  { %327 = vrot.lane.b32.xlu0 %v324_v43, %s2279_s11  ;;  %v325_v46 = vmul.f32 0.0, %v324_v43 }
 0x1e7   :  { %v328_v44 = vpop.permute.xlu0 %327 }
 0x1e8   :  { %v330_v45 = vmul.f32 %v328_v44, %v324_v43 }
 0x1ea   :  { %332 = vrot.lane.b32.xlu1 %v330_v45, %s2280_s12 }
 0x25c   :  { %v333_v47 = vpop.permute.xlu1 %332 }
 0x25d   :  { %v335_v48 = vadd.f32 %v333_v47, %v325_v46 }
 0x25f   :  { %2205 = vtanh.f32 %v335_v48 }
 0x269   :  { %v2206_v51 = vpop.eup %2205 }
 0x26a   :  { %338 = vrot.lane.b32.xlu0 %v2206_v51, %s2279_s11 }
 0x2dc   :  { %v339_v52 = vpop.permute.xlu0 %338 }
 0x2dd   :  { %v341_v53 = vmul.f32 %v339_v52, %v324_v43 }
 0x2df   :  { %v342_v54 = vpack.c.bf16 %v341_v53, %v341_v53 }
 0x2e1   :  { %344 = vrot.lane.b32.xlu1 %v342_v54, %s2280_s12 }
 0x353   :  { %v345_v55 = vpop.permute.xlu1 %344 }
 0x354   :  { %1964 = vmatmul.mubr.msk.bf16.vlgmr.msra.gmra.mrb[0].mxu1 %vm224_vm9, %v345_v55 }
 0x355   :  { %1976 = vmatpush3.bf16.msra.mxu1 %v2342_v11  ;;  %1979 = vmatprep.mubr.msk.bf16.mxu1 %vm2277_vm0, %v2276_v6 }
 0x356   :  { %1977 = vmatprep.subr.bf16.mxu1 %v2276_v6 }
 0x359   :  { %1978 = vmatpush3.bf16.msra.mxu1 %v2354_v13 }
 0x35a   :  { %1991 = vmatprep.subr.bf16.mxu1 %v2276_v6 }
 0x35c   :  { %1980 = vmatmul.mubr.msk.bf16.vlgmr.msra.gmra.mrb[8].mxu1 %vm224_vm9, %v345_v55 }
 0x35d   :  { %1992 = vmatpush3.bf16.msra.mxu1 %v2324_v7  ;;  %1995 = vmatprep.mubr.msk.bf16.mxu1 %vm2277_vm0, %v2276_v6 }
 0x35e   :  { %1993 = vmatprep.subr.bf16.mxu1 %v2276_v6 }
 0x361   :  { %1994 = vmatpush3.bf16.msra.mxu1 %v2333_v9 }
 0x362   :  { %2007 = vmatprep.subr.bf16.mxu1 %v2276_v6 }
 0x427   :  { %v395_v57 = vpop.f32.mrb[0].mxu1 }
 0x428   :  { %v2143_v58 = vadd.f32 %v2435_v56, %v395_v57  ;;  %v1965_v59 = vpop.f32.mrb[1].mxu1 }
 0x429   :  { %v398_v60 = vpop.f32.mrb[2].mxu1 }
 0x42a   :  { %v402_v61 = vmul.f32 %v2143_v58, %v2393_v36  ;;  %v1966_v62 = vpop.f32.mrb[3].mxu1 }
 0x42c   :  { %2207 = vtanh.f32 %v402_v61 }
 0x42f   :  { %v511_v1 = vpop.f32.mrb[8].mxu1 }
 0x430   :  { %v517_v2 = vadd.f32 %v511_v1, %v180_v63  ;;  %v1981_v3 = vpop.f32.mrb[9].mxu1 }
 0x431   :  { %v514_v4 = vpop.f32.mrb[10].mxu1 }
 0x432   :  { %v518_v5 = vmul.f32 %v517_v2, %v2393_v36  ;;  %v1982_v8 = vpop.f32.mrb[11].mxu1 }
 0x434   :  { %2209 = vtanh.f32 %v518_v5 }
 0x436   :  { %v2208_v10 = vpop.eup %2207 }
 0x437   :  { %v404_v12 = vmul.f32 %v2208_v10, %v2393_v36  ;;  %v185_v10 = vadd.f32 %v2388_v31, %v2386_v30 }
 0x439   :  { %v405_v14 = vadd.f32 %v404_v12, %v2396_v41 }
 0x43b   :  { %408 = vrot.lane.b32.xlu0 %v405_v14, %s2279_s11  ;;  %v406_v23 = vmul.f32 0.0, %v405_v14 }
 0x43e   :  { %v2210_v16 = vpop.eup %2209 }
 0x43f   :  { %v520_v17 = vmul.f32 %v2210_v16, %v2393_v36 }
 0x441   :  { %v521_v18 = vadd.f32 %v520_v17, %v2396_v41 }
 0x443   :  { %524 = vrot.lane.b32.xlu1 %v521_v18, %s2279_s11  ;;  %v522_v26 = vmul.f32 %v521_v18, %v335_v48 }
 0x4ad   :  { %v409_v19 = vpop.permute.xlu0 %408 }
 0x4ae   :  { %v411_v20 = vmul.f32 %v409_v19, %v405_v14 }
 0x4b0   :  { %413 = vrot.lane.b32.xlu0 %v411_v20, %s2280_s12 }
 0x4b5   :  { %v525_v21 = vpop.permute.xlu1 %524 }
 0x4b6   :  { %v527_v22 = vmul.f32 %v525_v21, %v521_v18 }
 0x4b8   :  { %529 = vrot.lane.b32.xlu1 %v527_v22, %s2280_s12 }
 0x522   :  { %v414_v24 = vpop.permute.xlu0 %413 }
 0x523   :  { %v2449_v25 = vadd.f32 %v414_v24, %v406_v23 }
 0x525   :  { %2211 = vtanh.f32 %v2449_v25 }
 0x52a   :  { %v530_v27 = vpop.permute.xlu1 %529 }
 0x52b   :  { %v2452_v28 = vadd.f32 %v530_v27, %v522_v26 }
 0x52d   :  { %2213 = vtanh.f32 %v2452_v28 }
 0x52f   :  { %v2212_v29 = vpop.eup %2211 }
 0x530   :  { %419 = vrot.lane.b32.xlu0 %v2212_v29, %s2279_s11 }
 0x534   :  { %70 = vperm.xlu0 %2189, %v50_v32  }
 0x537   :  { %v2214_v35 = vpop.eup %2213 }
 0x538   :  { %76 = vperm.xlu0 %2189, %v52_v33   ;;  %535 = vrot.lane.b32.xlu1 %v2214_v35, %s2279_s11 }
 0x53c   :  { %73 = vperm.xlu1 %2190, %v51_v37  }
 0x540   :  { %79 = vperm.xlu1 %2190, %v53_v38  }
 0x5a2   :  { %v420_v39 = vpop.permute.xlu0 %419 }
 0x5a3   :  { %v2469_v40 = vmul.f32 %v420_v39, %v405_v14 }
 0x5a5   :  { %v430_v42 = vpack.c.bf16 %v2469_v40, %v2469_v40 }
 0x5a7   :  { %432 = vrot.lane.b32.xlu0 %v430_v42, %s2280_s12 }
 0x5aa   :  { %v536_v43 = vpop.permute.xlu1 %535 }
 0x5ab   :  { %v538_v44 = vmul.f32 %v536_v43, %v521_v18 }
 0x5ad   :  { %v539_v45 = vpack.c.bf16 %v538_v44, %v538_v44 }
 0x5af   :  { %541 = vrot.lane.b32.xlu1 %v539_v45, %s2280_s12 }
 0x5b3   :  { %v71_v46 = vpop.permute.xlu0 %70 }
 0x5b4   :  { %vm85_vm10 = vcmp.eq.s32.totalorder %v2365_v15, %v71_v46 }
 0x5b5   :  { %v93_v51 = vsel %vm85_vm10, 1.0, %v2276_v6 }
 0x5b7   :  { %v77_v47 = vpop.permute.xlu0 %76 }
 0x5b8   :  { %vm87_vm12 = vcmp.eq.s32.totalorder %v2365_v15, %v77_v47 }
 0x5b9   :  { %v95_v55 = vsel %vm87_vm12, 1.0, %v2276_v6 }
 0x5bb   :  { %v74_v48 = vpop.permute.xlu1 %73 }
 0x5bc   :  { %vm86_vm11 = vcmp.eq.s32.totalorder %v2365_v15, %v74_v48 }
 0x5bd   :  { %v94_v52 = vsel %vm86_vm11, 1.0, %v2276_v6 }
 0x5be   :  { %v99_v53 = vpack.c.bf16 %v94_v52, %v93_v51 }
 0x5bf   :  { %v80_v54 = vpop.permute.xlu1 %79 }
 0x5c0   :  { %vm88_vm13 = vcmp.eq.s32.totalorder %v2365_v15, %v80_v54  ;;  %1939 = vmatprep.mubr.msk.bf16.mxu0 %vm129_vm5, %v99_v53 }
 0x5c1   :  { %v96_v57 = vsel %vm88_vm13, 1.0, %v2276_v6 }
 0x5c2   :  { %v100_v58 = vpack.c.bf16 %v96_v57, %v95_v55 }
 0x5c4   :  { %1940 = vmatmul.mubr.msk.bf16.gmra.mrb[4].mxu0 %vm129_vm5, %v100_v58 }
 0x5c5   :  { %1971 = vmatprep.mubr.msk.bf16.mxu0 %vm2277_vm0, %v2276_v6 }
 0x619   :  { %v433_v59 = vpop.permute.xlu0 %432 }
 0x61a   :  { %1972 = vmatmul.mubr.msk.bf16.vlgmr.msra.gmra.mrb[8].mxu0 %vm224_vm9, %v433_v59 }
 0x61b   :  { %1984 = vmatpush3.bf16.msra.mxu0 %v2405_v49  ;;  %1987 = vmatprep.mubr.msk.bf16.mxu0 %vm2277_vm0, %v2276_v6 }
 0x61c   :  { %1985 = vmatprep.subr.bf16.mxu0 %v2276_v6 }
 0x61f   :  { %1986 = vmatpush3.bf16.msra.mxu0 %v2411_v50 }
 0x620   :  { %1999 = vmatprep.subr.bf16.mxu0 %v2276_v6 }
 0x621   :  { %v542_v15 = vpop.permute.xlu1 %541 }
 0x626   :  { %1988 = vmatmul.mubr.msk.bf16.vlgmr.msra.gmra.mrb[8].mxu0 %vm224_vm9, %v542_v15 }
 0x627   :  { %2000 = vmatpush3.bf16.msra.mxu0 %v2342_v11  ;;  %2003 = vmatprep.mubr.msk.bf16.mxu0 %vm2277_vm0, %v2276_v6 }
 0x628   :  { %2001 = vmatprep.subr.bf16.mxu0 %v2276_v6 }
 0x62b   :  { %2002 = vmatpush3.bf16.msra.mxu0 %v2354_v13 }
 0x62c   :  { %2015 = vmatprep.subr.bf16.mxu0 %v2276_v6 }
 0x62e   :  { %2004 = vmatmul.mubr.msk.bf16.vlgmr.msra.gmra.mrb[12].mxu0 %vm224_vm9, %v542_v15  ;;  %v188_v15 = vadd.f32 %v2391_v34, %v2386_v30 }
 0x62f   :  { %2016 = vmatpush3.bf16.msra.mxu0 %v2324_v7  ;;  %2019 = vmatprep.mubr.msk.bf16.mxu0 %vm2277_vm0, %v2276_v6 }
 0x630   :  { %2017 = vmatprep.subr.bf16.mxu0 %v2276_v6 }
 0x633   :  { %2018 = vmatpush3.bf16.msra.mxu0 %v2333_v9 }
 0x634   :  { %2031 = vmatprep.subr.bf16.mxu0 %v2276_v6 }
 0x697   :  { %v2508_v60 = vpop.f32.mrb[4].mxu0 }
 0x698   :  { %v2510_v61 = vpop.f32.mrb[5].mxu0 }
 0x699   :  { %v2512_v62 = vpop.f32.mrb[6].mxu0 }
 0x69a   :  { %v2514_v63 = vpop.f32.mrb[7].mxu0 }
 0x6f9   :  { %v580_v1 = vpop.f32.mrb[8].mxu0 }
 0x6fa   :  { %v2144_v2 = vadd.f32 %v2435_v56, %v580_v1  ;;  %v1989_v3 = vpop.f32.mrb[9].mxu0 }
 0x6fb   :  { %v583_v4 = vpop.f32.mrb[10].mxu0 }
 0x6fc   :  { %v587_v5 = vmul.f32 %v2144_v2, %v2393_v36  ;;  %v1990_v8 = vpop.f32.mrb[11].mxu0 }
 0x6fe   :  { %2215 = vtanh.f32 %v587_v5 }
 0x701   :  { %v696_v12 = vpop.f32.mrb[12].mxu0 }
 0x702   :  { %v702_v14 = vadd.f32 %v696_v12, %v185_v10  ;;  %v2005_v16 = vpop.f32.mrb[13].mxu0 }
 0x703   :  { %v699_v17 = vpop.f32.mrb[14].mxu0 }
 0x704   :  { %v703_v18 = vmul.f32 %v702_v14, %v2393_v36  ;;  %v2006_v19 = vpop.f32.mrb[15].mxu0 }
 0x706   :  { %2217 = vtanh.f32 %v703_v18 }
 0x708   :  { %v2216_v20 = vpop.eup %2215 }
 0x709   :  { %v589_v21 = vmul.f32 %v2216_v20, %v2393_v36 }
 0x70b   :  { %v590_v22 = vadd.f32 %v589_v21, %v2396_v41 }
 0x70d   :  { %593 = vrot.lane.b32.xlu0 %v590_v22, %s2279_s11  ;;  %v591_v33 = vmul.f32 %v590_v22, %v2449_v25 }
 0x710   :  { %v2218_v23 = vpop.eup %2217 }
 0x711   :  { %v705_v24 = vmul.f32 %v2218_v23, %v2393_v36 }
 0x713   :  { %v706_v31 = vadd.f32 %v705_v24, %v2396_v41 }
 0x715   :  { %709 = vrot.lane.b32.xlu1 %v706_v31, %s2279_s11  ;;  %v707_v38 = vmul.f32 %v706_v31, %v2452_v28 }
 0x77f   :  { %v594_v26 = vpop.permute.xlu0 %593 }
 0x780   :  { %v596_v27 = vmul.f32 %v594_v26, %v590_v22 }
 0x782   :  { %598 = vrot.lane.b32.xlu0 %v596_v27, %s2280_s12 }
 0x787   :  { %v710_v29 = vpop.permute.xlu1 %709 }
 0x788   :  { %v712_v32 = vmul.f32 %v710_v29, %v706_v31 }
 0x78a   :  { %714 = vrot.lane.b32.xlu1 %v712_v32, %s2280_s12 }
 0x7f4   :  { %v599_v35 = vpop.permute.xlu0 %598 }
 0x7f5   :  { %v2530_v37 = vadd.f32 %v599_v35, %v591_v33 }
 0x7f7   :  { %2219 = vtanh.f32 %v2530_v37 }
 0x7fc   :  { %v715_v39 = vpop.permute.xlu1 %714 }
 0x7fd   :  { %v2534_v42 = vadd.f32 %v715_v39, %v707_v38 }
 0x7ff   :  { %2221 = vtanh.f32 %v2534_v42 }
 0x801   :  { %v2220_v43 = vpop.eup %2219 }
 0x802   :  { %604 = vrot.lane.b32.xlu0 %v2220_v43, %s2279_s11 }
 0x809   :  { %v2222_v44 = vpop.eup %2221 }
 0x80a   :  { %720 = vrot.lane.b32.xlu1 %v2222_v44, %s2279_s11 }
 0x874   :  { %v605_v45 = vpop.permute.xlu0 %604 }
 0x875   :  { %v2539_v25 = vmul.f32 %v605_v45, %v590_v22 }
 0x877   :  { %v615_v46 = vpack.c.bf16 %v2539_v25, %v2539_v25 }
 0x879   :  { %617 = vrot.lane.b32.xlu0 %v615_v46, %s2280_s12 }
 0x87c   :  { %v721_v28 = vpop.permute.xlu1 %720 }
 0x87d   :  { %v723_v47 = vmul.f32 %v721_v28, %v706_v31 }
 0x87f   :  { %v724_v48 = vpack.c.bf16 %v723_v47, %v723_v47 }
 0x881   :  { %726 = vrot.lane.b32.xlu1 %v724_v48, %s2280_s12 }
 0x8eb   :  { %v618_v51 = vpop.permute.xlu0 %617 }
 0x8ec   :  { %1996 = vmatmul.mubr.msk.bf16.vlgmr.msra.gmra.mrb[12].mxu1 %vm224_vm9, %v618_v51 }
 0x8ed   :  { %2008 = vmatpush3.bf16.msra.mxu1 %v2405_v49  ;;  %2011 = vmatprep.mubr.msk.bf16.mxu1 %vm2277_vm0, %v2276_v6 }
 0x8ee   :  { %2009 = vmatprep.subr.bf16.mxu1 %v2276_v6 }
 0x8f1   :  { %2010 = vmatpush3.bf16.msra.mxu1 %v2411_v50 }
 0x8f2   :  { %2023 = vmatprep.subr.bf16.mxu1 %v2276_v6 }
 0x8f3   :  { %v727_v52 = vpop.permute.xlu1 %726 }
 0x8f8   :  { %2012 = vmatmul.mubr.msk.bf16.vlgmr.msra.gmra.mrb[12].mxu1 %vm224_vm9, %v727_v52 }
 0x8f9   :  { %2024 = vmatpush3.bf16.msra.mxu1 %v2342_v11  ;;  %2027 = vmatprep.mubr.msk.bf16.mxu1 %vm2277_vm0, %v2276_v6 }
 0x8fa   :  { %2025 = vmatprep.subr.bf16.mxu1 %v2276_v6 }
 0x8fd   :  { %2026 = vmatpush3.bf16.msra.mxu1 %v2354_v13 }
 0x8fe   :  { %2039 = vmatprep.subr.bf16.mxu1 %v2276_v6 }
 0x900   :  { %2028 = vmatmul.mubr.msk.bf16.vlgmr.msra.gmra.mrb[16].mxu1 %vm224_vm9, %v727_v52  ;;  %v193_v52 = vadd.f32 %v2386_v30, %v2510_v61 }
 0x901   :  { %2040 = vmatpush3.bf16.msra.mxu1 %v2324_v7  ;;  %2043 = vmatprep.mubr.msk.bf16.mxu1 %vm2277_vm0, %v2276_v6 }
 0x902   :  { %2041 = vmatprep.subr.bf16.mxu1 %v2276_v6 }
 0x905   :  { %2042 = vmatpush3.bf16.msra.mxu1 %v2333_v9 }
 0x906   :  { %2055 = vmatprep.subr.bf16.mxu1 %v2276_v6 }
 0x9cb   :  { %v765_v53 = vpop.f32.mrb[12].mxu1 }
 0x9cc   :  { %v2145_v54 = vadd.f32 %v2435_v56, %v765_v53  ;;  %v2013_v55 = vpop.f32.mrb[13].mxu1 }
 0x9cd   :  { %v768_v57 = vpop.f32.mrb[14].mxu1 }
 0x9ce   :  { %v772_v58 = vmul.f32 %v2145_v54, %v2393_v36  ;;  %v2014_v59 = vpop.f32.mrb[15].mxu1 }
 0x9d0   :  { %2223 = vtanh.f32 %v772_v58 }
 0x9d3   :  { %v881_v1 = vpop.f32.mrb[16].mxu1 }
 0x9d4   :  { %v887_v2 = vadd.f32 %v881_v1, %v188_v15  ;;  %v2029_v3 = vpop.f32.mrb[17].mxu1 }
 0x9d5   :  { %v884_v4 = vpop.f32.mrb[18].mxu1 }
 0x9d6   :  { %v888_v5 = vmul.f32 %v887_v2, %v2393_v36  ;;  %v2030_v8 = vpop.f32.mrb[19].mxu1 }
 0x9d8   :  { %2225 = vtanh.f32 %v888_v5 }
 0x9da   :  { %v2224_v10 = vpop.eup %2223 }
 0x9db   :  { %v774_v12 = vmul.f32 %v2224_v10, %v2393_v36 }
 0x9dd   :  { %v775_v14 = vadd.f32 %v774_v12, %v2396_v41 }
 0x9df   :  { %778 = vrot.lane.b32.xlu0 %v775_v14, %s2279_s11  ;;  %v776_v22 = vmul.f32 %v775_v14, %v2530_v37 }
 0x9e2   :  { %v2226_v16 = vpop.eup %2225 }
 0x9e3   :  { %v890_v17 = vmul.f32 %v2226_v16, %v2393_v36 }
 0x9e5   :  { %v891_v34 = vadd.f32 %v890_v17, %v2396_v41 }
 0x9e7   :  { %894 = vrot.lane.b32.xlu1 %v891_v34, %s2279_s11  ;;  %v892_v31 = vmul.f32 %v891_v34, %v2534_v42 }
 0xa51   :  { %v779_v18 = vpop.permute.xlu0 %778 }
 0xa52   :  { %v781_v19 = vmul.f32 %v779_v18, %v775_v14 }
 0xa54   :  { %783 = vrot.lane.b32.xlu0 %v781_v19, %s2280_s12 }
 0xa59   :  { %v895_v20 = vpop.permute.xlu1 %894 }
 0xa5a   :  { %v897_v21 = vmul.f32 %v895_v20, %v891_v34 }
 0xa5c   :  { %899 = vrot.lane.b32.xlu1 %v897_v21, %s2280_s12 }
 0xac6   :  { %v784_v23 = vpop.permute.xlu0 %783 }
 0xac7   :  { %v2580_v24 = vadd.f32 %v784_v23, %v776_v22 }
 0xac9   :  { %2227 = vtanh.f32 %v2580_v24 }
 0xace   :  { %v900_v26 = vpop.permute.xlu1 %899 }
 0xacf   :  { %v2584_v27 = vadd.f32 %v900_v26, %v892_v31 }
 0xad1   :  { %2229 = vtanh.f32 %v2584_v27 }
 0xad3   :  { %v2228_v29 = vpop.eup %2227 }
 0xad4   :  { %789 = vrot.lane.b32.xlu0 %v2228_v29, %s2279_s11 }
 0xadb   :  { %v2230_v32 = vpop.eup %2229 }
 0xadc   :  { %905 = vrot.lane.b32.xlu1 %v2230_v32, %s2279_s11 }
 0xb46   :  { %v790_v33 = vpop.permute.xlu0 %789 }
 0xb47   :  { %v2589_v35 = vmul.f32 %v790_v33, %v775_v14 }
 0xb49   :  { %v800_v37 = vpack.c.bf16 %v2589_v35, %v2589_v35 }
 0xb4b   :  { %802 = vrot.lane.b32.xlu0 %v800_v37, %s2280_s12 }
 0xb4e   :  { %v906_v38 = vpop.permute.xlu1 %905 }
 0xb4f   :  { %v908_v39 = vmul.f32 %v906_v38, %v891_v34 }
 0xb51   :  { %v909_v42 = vpack.c.bf16 %v908_v39, %v908_v39 }
 0xb53   :  { %911 = vrot.lane.b32.xlu1 %v909_v42, %s2280_s12 }
 0xbbd   :  { %v803_v43 = vpop.permute.xlu0 %802 }
 0xbbe   :  { %2020 = vmatmul.mubr.msk.bf16.vlgmr.msra.gmra.mrb[16].mxu0 %vm224_vm9, %v803_v43 }
 0xbbf   :  { %2032 = vmatpush3.bf16.msra.mxu0 %v2405_v49  ;;  %2035 = vmatprep.mubr.msk.bf16.mxu0 %vm2277_vm0, %v2276_v6 }
 0xbc0   :  { %2033 = vmatprep.subr.bf16.mxu0 %v2276_v6 }
 0xbc3   :  { %2034 = vmatpush3.bf16.msra.mxu0 %v2411_v50 }
 0xbc4   :  { %2047 = vmatprep.subr.bf16.mxu0 %v2276_v6 }
 0xbc5   :  { %v912_v44 = vpop.permute.xlu1 %911 }
 0xbca   :  { %2036 = vmatmul.mubr.msk.bf16.vlgmr.msra.gmra.mrb[16].mxu0 %vm224_vm9, %v912_v44 }
 0xbcb   :  { %2048 = vmatpush3.bf16.msra.mxu0 %v2342_v11  ;;  %2051 = vmatprep.mubr.msk.bf16.mxu0 %vm2277_vm0, %v2276_v6 }
 0xbcc   :  { %2049 = vmatprep.subr.bf16.mxu0 %v2276_v6 }
 0xbcf   :  { %2050 = vmatpush3.bf16.msra.mxu0 %v2354_v13 }
 0xbd0   :  { %2063 = vmatprep.subr.bf16.mxu0 %v2276_v6 }
 0xbd2   :  { %2052 = vmatmul.mubr.msk.bf16.vlgmr.msra.gmra.mrb[20].mxu0 %vm224_vm9, %v912_v44  ;;  %v196_v44 = vadd.f32 %v2386_v30, %v2514_v63 }
 0xbd3   :  { %2064 = vmatpush3.bf16.msra.mxu0 %v2324_v7  ;;  %2067 = vmatprep.mubr.msk.bf16.mxu0 %vm2277_vm0, %v2276_v6 }
 0xbd4   :  { %2065 = vmatprep.subr.bf16.mxu0 %v2276_v6 }
 0xbd7   :  { %2066 = vmatpush3.bf16.msra.mxu0 %v2333_v9 }
 0xbd8   :  { %2079 = vmatprep.subr.bf16.mxu0 %v2276_v6 }
 0xc9d   :  { %v950_v45 = vpop.f32.mrb[16].mxu0 }
 0xc9e   :  { %v2146_v46 = vadd.f32 %v2435_v56, %v950_v45  ;;  %v2037_v28 = vpop.f32.mrb[17].mxu0 }
 0xc9f   :  { %v953_v47 = vpop.f32.mrb[18].mxu0 }
 0xca0   :  { %v957_v48 = vmul.f32 %v2146_v46, %v2393_v36  ;;  %v2038_v51 = vpop.f32.mrb[19].mxu0 }
 0xca2   :  { %2231 = vtanh.f32 %v957_v48 }
 0xca5   :  { %v1066_v53 = vpop.f32.mrb[20].mxu0 }
 0xca6   :  { %v1072_v54 = vadd.f32 %v1066_v53, %v193_v52  ;;  %v2053_v55 = vpop.f32.mrb[21].mxu0 }
 0xca7   :  { %v1069_v57 = vpop.f32.mrb[22].mxu0 }
 0xca8   :  { %v1073_v58 = vmul.f32 %v1072_v54, %v2393_v36  ;;  %v2054_v59 = vpop.f32.mrb[23].mxu0 }
 0xcaa   :  { %2233 = vtanh.f32 %v1073_v58 }
 0xcac   :  { %v2232_v15 = vpop.eup %2231 }
 0xcad   :  { %v959_v1 = vmul.f32 %v2232_v15, %v2393_v36 }
 0xcaf   :  { %v960_v2 = vadd.f32 %v959_v1, %v2396_v41 }
 0xcb1   :  { %963 = vrot.lane.b32.xlu0 %v960_v2, %s2279_s11  ;;  %v961_v14 = vmul.f32 %v960_v2, %v2580_v24 }
 0xcb4   :  { %v2234_v3 = vpop.eup %2233 }
 0xcb5   :  { %v1075_v4 = vmul.f32 %v2234_v3, %v2393_v36 }
 0xcb7   :  { %v1076_v61 = vadd.f32 %v1075_v4, %v2396_v41 }
 0xcb9   :  { %1079 = vrot.lane.b32.xlu1 %v1076_v61, %s2279_s11  ;;  %v1077_v34 = vmul.f32 %v1076_v61, %v2584_v27 }
 0xd23   :  { %v964_v5 = vpop.permute.xlu0 %963 }
 0xd24   :  { %v966_v8 = vmul.f32 %v964_v5, %v960_v2 }
 0xd26   :  { %968 = vrot.lane.b32.xlu0 %v966_v8, %s2280_s12 }
 0xd2b   :  { %v1080_v10 = vpop.permute.xlu1 %1079 }
 0xd2c   :  { %v1082_v12 = vmul.f32 %v1080_v10, %v1076_v61 }
 0xd2e   :  { %1084 = vrot.lane.b32.xlu1 %v1082_v12, %s2280_s12 }
 0xd98   :  { %v969_v16 = vpop.permute.xlu0 %968 }
 0xd99   :  { %v2630_v17 = vadd.f32 %v969_v16, %v961_v14 }
 0xd9b   :  { %2235 = vtanh.f32 %v2630_v17 }
 0xda0   :  { %v1085_v18 = vpop.permute.xlu1 %1084 }
 0xda1   :  { %v2634_v19 = vadd.f32 %v1085_v18, %v1077_v34 }
 0xda3   :  { %2237 = vtanh.f32 %v2634_v19 }
 0xda5   :  { %v2236_v20 = vpop.eup %2235 }
 0xda6   :  { %974 = vrot.lane.b32.xlu0 %v2236_v20, %s2279_s11 }
 0xdad   :  { %v2238_v21 = vpop.eup %2237 }
 0xdae   :  { %1090 = vrot.lane.b32.xlu1 %v2238_v21, %s2279_s11 }
 0xe18   :  { %v975_v22 = vpop.permute.xlu0 %974 }
 0xe19   :  { %v2639_v23 = vmul.f32 %v975_v22, %v960_v2 }
 0xe1b   :  { %v985_v24 = vpack.c.bf16 %v2639_v23, %v2639_v23 }
 0xe1d   :  { %987 = vrot.lane.b32.xlu0 %v985_v24, %s2280_s12 }
 0xe20   :  { %v1091_v31 = vpop.permute.xlu1 %1090 }
 0xe21   :  { %v1093_v26 = vmul.f32 %v1091_v31, %v1076_v61 }
 0xe23   :  { %v1094_v27 = vpack.c.bf16 %v1093_v26, %v1093_v26 }
 0xe25   :  { %1096 = vrot.lane.b32.xlu1 %v1094_v27, %s2280_s12 }
 0xe8f   :  { %v988_v29 = vpop.permute.xlu0 %987 }
 0xe90   :  { %2044 = vmatmul.mubr.msk.bf16.vlgmr.msra.gmra.mrb[20].mxu1 %vm224_vm9, %v988_v29 }
 0xe91   :  { %2056 = vmatpush3.bf16.msra.mxu1 %v2405_v49  ;;  %2059 = vmatprep.mubr.msk.bf16.mxu1 %vm2277_vm0, %v2276_v6 }
 0xe92   :  { %2057 = vmatprep.subr.bf16.mxu1 %v2276_v6 }
 0xe95   :  { %2058 = vmatpush3.bf16.msra.mxu1 %v2411_v50 }
 0xe96   :  { %2071 = vmatprep.subr.bf16.mxu1 %v2276_v6 }
 0xe97   :  { %v1097_v32 = vpop.permute.xlu1 %1096 }
 0xe9c   :  { %2060 = vmatmul.mubr.msk.bf16.vlgmr.msra.gmra.mrb[20].mxu1 %vm224_vm9, %v1097_v32 }
 0xe9d   :  { %2072 = vmatpush3.bf16.msra.mxu1 %v2342_v11  ;;  %2075 = vmatprep.mubr.msk.bf16.mxu1 %vm2277_vm0, %v2276_v6 }
 0xe9e   :  { %2073 = vmatprep.subr.bf16.mxu1 %v2276_v6 }
 0xea1   :  { %2074 = vmatpush3.bf16.msra.mxu1 %v2354_v13 }
 0xea2   :  { %2087 = vmatprep.subr.bf16.mxu1 %v2276_v6 }
 0xea4   :  { %2076 = vmatmul.mubr.msk.bf16.vlgmr.msra.gmra.mrb[24].mxu1 %vm224_vm9, %v1097_v32 }
 0xea5   :  { %2088 = vmatpush3.bf16.msra.mxu1 %v2324_v7  ;;  %2091 = vmatprep.mubr.msk.bf16.mxu1 %vm2277_vm0, %v2276_v6 }
 0xea6   :  { %2089 = vmatprep.subr.bf16.mxu1 %v2276_v6 }
 0xea9   :  { %2090 = vmatpush3.bf16.msra.mxu1 %v2333_v9 }
 0xeaa   :  { %2103 = vmatprep.subr.bf16.mxu1 %v2276_v6 }
 0xf6f   :  { %v1135_v33 = vpop.f32.mrb[20].mxu1 }
 0xf70   :  { %v2147_v37 = vadd.f32 %v2435_v56, %v1135_v33  ;;  %v2061_v38 = vpop.f32.mrb[21].mxu1 }
 0xf71   :  { %v1138_v39 = vpop.f32.mrb[22].mxu1 }
 0xf72   :  { %v1142_v42 = vmul.f32 %v2147_v37, %v2393_v36  ;;  %v2062_v43 = vpop.f32.mrb[23].mxu1 }
 0xf74   :  { %2239 = vtanh.f32 %v1142_v42 }
 0xf77   :  { %v1251_v45 = vpop.f32.mrb[24].mxu1 }
 0xf78   :  { %v1257_v46 = vadd.f32 %v1251_v45, %v196_v44  ;;  %v2077_v28 = vpop.f32.mrb[25].mxu1 }
 0xf79   :  { %v1254_v47 = vpop.f32.mrb[26].mxu1 }
 0xf7a   :  { %v1258_v48 = vmul.f32 %v1257_v46, %v2393_v36  ;;  %v2078_v51 = vpop.f32.mrb[27].mxu1 }
 0xf7c   :  { %2241 = vtanh.f32 %v1258_v48 }
 0xf7e   :  { %v2240_v52 = vpop.eup %2239 }
 0xf7f   :  { %v1144_v53 = vmul.f32 %v2240_v52, %v2393_v36 }
 0xf81   :  { %v1145_v54 = vadd.f32 %v1144_v53, %v2396_v41 }
 0xf83   :  { %1148 = vrot.lane.b32.xlu0 %v1145_v54, %s2279_s11  ;;  %v1146_v2 = vmul.f32 %v1145_v54, %v2630_v17 }
 0xf86   :  { %v2242_v55 = vpop.eup %2241 }
 0xf87   :  { %v1260_v57 = vmul.f32 %v2242_v55, %v2393_v36 }
 0xf89   :  { %v1261_v63 = vadd.f32 %v1260_v57, %v2396_v41 }
 0xf8b   :  { %1264 = vrot.lane.b32.xlu1 %v1261_v63, %s2279_s11  ;;  %v1262_v61 = vmul.f32 %v1261_v63, %v2634_v19 }
 0xff5   :  { %v1149_v58 = vpop.permute.xlu0 %1148 }
 0xff6   :  { %v1151_v59 = vmul.f32 %v1149_v58, %v1145_v54 }
 0xff8   :  { %1153 = vrot.lane.b32.xlu0 %v1151_v59, %s2280_s12 }
 0xffd   :  { %v1265_v15 = vpop.permute.xlu1 %1264 }
 0xffe   :  { %v1267_v1 = vmul.f32 %v1265_v15, %v1261_v63 }
0x1000   :  { %1269 = vrot.lane.b32.xlu1 %v1267_v1, %s2280_s12 }
0x106a   :  { %v1154_v3 = vpop.permute.xlu0 %1153 }
0x106b   :  { %v2680_v4 = vadd.f32 %v1154_v3, %v1146_v2 }
0x106d   :  { %2243 = vtanh.f32 %v2680_v4 }
0x1072   :  { %v1270_v5 = vpop.permute.xlu1 %1269 }
0x1073   :  { %v2684_v8 = vadd.f32 %v1270_v5, %v1262_v61  ;;  %v2271_v5 = vld [vmem:[%s2845_s1 + $0x20] sm:$0xff]  }
0x1075   :  { %2245 = vtanh.f32 %v2684_v8 }
0x1077   :  { %v2244_v10 = vpop.eup %2243 }
0x1078   :  { %1159 = vrot.lane.b32.xlu0 %v2244_v10, %s2279_s11 }
0x107f   :  { %v2246_v12 = vpop.eup %2245 }
0x1080   :  { %1275 = vrot.lane.b32.xlu1 %v2246_v12, %s2279_s11 }
0x10ea   :  { %v1160_v14 = vpop.permute.xlu0 %1159 }
0x10eb   :  { %v2689_v16 = vmul.f32 %v1160_v14, %v1145_v54 }
0x10ed   :  { %v1170_v17 = vpack.c.bf16 %v2689_v16, %v2689_v16 }
0x10ef   :  { %1172 = vrot.lane.b32.xlu0 %v1170_v17, %s2280_s12 }
0x10f2   :  { %v1276_v34 = vpop.permute.xlu1 %1275 }
0x10f3   :  { %v1278_v18 = vmul.f32 %v1276_v34, %v1261_v63  ;;  %v204_v34 = vadd.f32 %v2512_v62, %v2386_v30 }
0x10f5   :  { %v1279_v19 = vpack.c.bf16 %v1278_v18, %v1278_v18 }
0x10f7   :  { %1281 = vrot.lane.b32.xlu1 %v1279_v19, %s2280_s12 }
0x1161   :  { %v1173_v20 = vpop.permute.xlu0 %1172 }
0x1162   :  { %2068 = vmatmul.mubr.msk.bf16.vlgmr.msra.gmra.mrb[24].mxu0 %vm224_vm9, %v1173_v20 }
0x1163   :  { %2080 = vmatpush3.bf16.msra.mxu0 %v2405_v49  ;;  %2083 = vmatprep.mubr.msk.bf16.mxu0 %vm2277_vm0, %v2276_v6 }
0x1164   :  { %2081 = vmatprep.subr.bf16.mxu0 %v2276_v6 }
0x1167   :  { %2082 = vmatpush3.bf16.msra.mxu0 %v2411_v50 }
0x1168   :  { %2095 = vmatprep.subr.bf16.mxu0 %v2276_v6 }
0x1169   :  { %v1282_v21 = vpop.permute.xlu1 %1281 }
0x116e   :  { %2084 = vmatmul.mubr.msk.bf16.vlgmr.msra.gmra.mrb[24].mxu0 %vm224_vm9, %v1282_v21 }
0x116f   :  { %2096 = vmatpush3.bf16.msra.mxu0 %v2342_v11  ;;  %2099 = vmatprep.mubr.msk.bf16.mxu0 %vm2277_vm0, %v2276_v6 }
0x1170   :  { %2097 = vmatprep.subr.bf16.mxu0 %v2276_v6 }
0x1173   :  { %2098 = vmatpush3.bf16.msra.mxu0 %v2354_v13 }
0x1174   :  { %2111 = vmatprep.subr.bf16.mxu0 %v2276_v6 }
0x1176   :  { %2100 = vmatmul.mubr.msk.bf16.vlgmr.msra.gmra.mrb[28].mxu0 %vm224_vm9, %v1282_v21 }
0x1177   :  { %2112 = vmatpush3.bf16.msra.mxu0 %v2324_v7  ;;  %2115 = vmatprep.mubr.msk.bf16.mxu0 %vm2277_vm0, %v2276_v6  ;;  %v201_v7 = vadd.f32 %v2508_v60, %v2386_v30 }
0x1178   :  { %2113 = vmatprep.subr.bf16.mxu0 %v2276_v6 }
0x117b   :  { %2114 = vmatpush3.bf16.msra.mxu0 %v2333_v9 }
0x117c   :  { %2127 = vmatprep.subr.bf16.mxu0 %v2276_v6 }
0x1241   :  { %v1320_v11 = vpop.f32.mrb[24].mxu0 }
0x1242   :  { %v2148_v22 = vadd.f32 %v2435_v56, %v1320_v11  ;;  %v2085_v24 = vpop.f32.mrb[25].mxu0 }
0x1243   :  { %v1323_v13 = vpop.f32.mrb[26].mxu0 }
0x1244   :  { %v1327_v31 = vmul.f32 %v2148_v22, %v2393_v36  ;;  %v2086_v26 = vpop.f32.mrb[27].mxu0 }
0x1246   :  { %2247 = vtanh.f32 %v1327_v31 }
0x1249   :  { %v1436_v27 = vpop.f32.mrb[28].mxu0 }
0x124a   :  { %v1442_v29 = vadd.f32 %v1436_v27, %v201_v7  ;;  %v2101_v32 = vpop.f32.mrb[29].mxu0 }
0x124b   :  { %v1439_v33 = vpop.f32.mrb[30].mxu0 }
0x124c   :  { %v1443_v9 = vmul.f32 %v1442_v29, %v2393_v36  ;;  %v2102_v37 = vpop.f32.mrb[31].mxu0 }
0x124e   :  { %2249 = vtanh.f32 %v1443_v9 }
0x1250   :  { %v2248_v38 = vpop.eup %2247 }
0x1251   :  { %v1329_v39 = vmul.f32 %v2248_v38, %v2393_v36 }
0x1253   :  { %v1330_v42 = vadd.f32 %v1329_v39, %v2396_v41 }
0x1255   :  { %1333 = vrot.lane.b32.xlu0 %v1330_v42, %s2279_s11  ;;  %v1331_v48 = vmul.f32 %v1330_v42, %v2680_v4 }
0x1258   :  { %v2250_v43 = vpop.eup %2249 }
0x1259   :  { %v1445_v44 = vmul.f32 %v2250_v43, %v2393_v36 }
0x125b   :  { %v1446_v60 = vadd.f32 %v1445_v44, %v2396_v41 }
0x125d   :  { %1449 = vrot.lane.b32.xlu1 %v1446_v60, %s2279_s11  ;;  %v1447_v53 = vmul.f32 %v1446_v60, %v2684_v8 }
0x12c7   :  { %v1334_v45 = vpop.permute.xlu0 %1333 }
0x12c8   :  { %v1336_v46 = vmul.f32 %v1334_v45, %v1330_v42 }
0x12ca   :  { %1338 = vrot.lane.b32.xlu0 %v1336_v46, %s2280_s12 }
0x12cf   :  { %v1450_v28 = vpop.permute.xlu1 %1449 }
0x12d0   :  { %v1452_v47 = vmul.f32 %v1450_v28, %v1446_v60 }
0x12d2   :  { %1454 = vrot.lane.b32.xlu1 %v1452_v47, %s2280_s12 }
0x133c   :  { %v1339_v51 = vpop.permute.xlu0 %1338 }
0x133d   :  { %v2730_v52 = vadd.f32 %v1339_v51, %v1331_v48 }
0x133f   :  { %2251 = vtanh.f32 %v2730_v52 }
0x1344   :  { %v1455_v54 = vpop.permute.xlu1 %1454 }
0x1345   :  { %v2734_v55 = vadd.f32 %v1455_v54, %v1447_v53  ;;  %v2274_v53 = vld [vmem:[%s2845_s1 + $0x48] sm:$0xff]  }
0x1347   :  { %2253 = vtanh.f32 %v2734_v55 }
0x1349   :  { %v2252_v57 = vpop.eup %2251 }
0x134a   :  { %1344 = vrot.lane.b32.xlu0 %v2252_v57, %s2279_s11 }
0x1351   :  { %v2254_v63 = vpop.eup %2253 }
0x1352   :  { %1460 = vrot.lane.b32.xlu1 %v2254_v63, %s2279_s11 }
0x13bc   :  { %v1345_v58 = vpop.permute.xlu0 %1344 }
0x13bd   :  { %v2739_v59 = vmul.f32 %v1345_v58, %v1330_v42 }
0x13bf   :  { %v1355_v15 = vpack.c.bf16 %v2739_v59, %v2739_v59 }
0x13c1   :  { %1357 = vrot.lane.b32.xlu0 %v1355_v15, %s2280_s12 }
0x13c4   :  { %v1461_v1 = vpop.permute.xlu1 %1460 }
0x13c5   :  { %v1463_v2 = vmul.f32 %v1461_v1, %v1446_v60 }
0x13c7   :  { %v1464_v3 = vpack.c.bf16 %v1463_v2, %v1463_v2 }
0x13c9   :  { %1466 = vrot.lane.b32.xlu1 %v1464_v3, %s2280_s12  ;;  %v54_v3 = vld [vmem:[%s2844_s0 + $0x40] sm:$0xff] }
0x13ca   :  { %vm423_vm14 = vcmp.eq.s32.totalorder %v54_v3, 1  ;;  %vm793_vm15 = vcmp.eq.s32.totalorder %v54_v3, 3  ;;  %vm1533_vm1 = vcmp.eq.s32.totalorder %v54_v3, 7  ;;  %vm608_vm2 = vcmp.eq.s32.totalorder %v54_v3, 2 }
0x13cb   :  { %vm978_vm3 = vcmp.eq.s32.totalorder %v54_v3, 4  ;;  %vm1348_vm4 = vcmp.eq.s32.totalorder %v54_v3, 6  ;;  %vm1718_vm5 = vcmp.eq.s32.totalorder %v54_v3, 8 }
0x1433   :  { %v1358_v4 = vpop.permute.xlu0 %1357 }
0x1434   :  { %2092 = vmatmul.mubr.msk.bf16.vlgmr.msra.gmra.mrb[28].mxu1 %vm224_vm9, %v1358_v4 }
0x1435   :  { %2104 = vmatpush3.bf16.msra.mxu1 %v2405_v49  ;;  %2107 = vmatprep.mubr.msk.bf16.mxu1 %vm2277_vm0, %v2276_v6  ;;  %v2272_v49 = vld [vmem:[%s2845_s1 + $0x28] sm:$0xff]  }
0x1436   :  { %2105 = vmatprep.subr.bf16.mxu1 %v2276_v6 }
0x1439   :  { %2106 = vmatpush3.bf16.msra.mxu1 %v2411_v50 }
0x143a   :  { %2119 = vmatprep.subr.bf16.mxu1 %v2276_v6 }
0x143b   :  { %v1467_v61 = vpop.permute.xlu1 %1466 }
0x1440   :  { %2108 = vmatmul.mubr.msk.bf16.vlgmr.msra.gmra.mrb[28].mxu1 %vm224_vm9, %v1467_v61 }
0x1441   :  { %2120 = vmatpush3.bf16.msra.mxu1 %v2271_v5  ;;  %2123 = vmatprep.mubr.msk.bf16.mxu1 %vm2277_vm0, %v2276_v6  ;;  %v794_v5 = vsel %vm793_vm15, 1, %v2275_v0 }
0x1442   :  { %2121 = vmatprep.subr.bf16.mxu1 %v2276_v6 }
0x1445   :  { %2122 = vmatpush3.bf16.msra.mxu1 %v2272_v49 }
0x1446   :  { %2135 = vmatprep.subr.bf16.mxu1 %v2276_v6 }
0x1448   :  { %2124 = vmatmul.mubr.msk.bf16.vlgmr.msra.gmra.mrb[32].mxu1 %vm224_vm9, %v1467_v61 }
0x1449   :  { %2139 = vmatprep.mubr.msk.bf16.mxu1 %vm2277_vm0, %v2276_v6 }
0x1513   :  { %v1505_v50 = vpop.f32.mrb[28].mxu1 }
0x1514   :  { %v2149_v8 = vadd.f32 %v2435_v56, %v1505_v50  ;;  %v2109_v10 = vpop.f32.mrb[29].mxu1  ;;  %v1534_v50 = vsel %vm1533_vm1, 1, %v2275_v0 }
0x1515   :  { %v1508_v12 = vpop.f32.mrb[30].mxu1  ;;  %v979_v10 = vsel %vm978_vm3, 1, %v2275_v0 }
0x1516   :  { %v1512_v14 = vmul.f32 %v2149_v8, %v2393_v36  ;;  %v2110_v17 = vpop.f32.mrb[31].mxu1  ;;  %v609_v8 = vsel %vm608_vm2, 1, %v2275_v0  ;;  %v1349_v12 = vsel %vm1348_vm4, 1, %v2275_v0 }
0x1518   :  { %2255 = vtanh.f32 %v1512_v14  ;;  %v1719_v14 = vsel %vm1718_vm5, 1, %v2275_v0 }
0x151b   :  { %v1621_v18 = vpop.f32.mrb[32].mxu1 }
0x151c   :  { %v1627_v19 = vadd.f32 %v1621_v18, %v204_v34  ;;  %v2125_v20 = vpop.f32.mrb[33].mxu1 }
0x151d   :  { %v1624_v21 = vpop.f32.mrb[34].mxu1  ;;  %v2202_v20 = vld [vmem:[%s2845_s1 + $0x58] sm:$0xff]  }
0x151e   :  { %v1628_v11 = vmul.f32 %v1627_v19, %v2393_v36  ;;  %v2126_v22 = vpop.f32.mrb[35].mxu1  ;;  %v2201_v19 = vld [vmem:[%s2845_s1 + $0x50] sm:$0xff]  }
0x151f   :  { %2136 = vmatpush3.bf16.msra.mxu1 %v2201_v19 }
0x1520   :  { %2257 = vtanh.f32 %v1628_v11  ;;  %2137 = vmatprep.subr.bf16.mxu1 %v2276_v6 }
0x1522   :  { %v2256_v24 = vpop.eup %2255 }
0x1523   :  { %v1514_v13 = vmul.f32 %v2256_v24, %v2393_v36  ;;  %2138 = vmatpush3.bf16.msra.mxu1 %v2202_v20 }
0x1525   :  { %v1515_v31 = vadd.f32 %v1514_v13, %v2396_v41 }
0x1527   :  { %1518 = vrot.lane.b32.xlu0 %v1515_v31, %s2279_s11  ;;  %v1516_v33 = vmul.f32 %v1515_v31, %v2730_v52  ;;  %v2273_v52 = vld [vmem:[%s2845_s1 + $0x40] sm:$0xff]  }
0x152a   :  { %v2258_v26 = vpop.eup %2257 }
0x152b   :  { %v1630_v7 = vmul.f32 %v2258_v26, %v2393_v36 }
0x152d   :  { %v1631_v30 = vadd.f32 %v1630_v7, %v2396_v41 }
0x152f   :  { %1634 = vrot.lane.b32.xlu1 %v1631_v30, %s2279_s11  ;;  %v1632_v38 = vmul.f32 %v1631_v30, %v2734_v55 }
0x1599   :  { %v1519_v62 = vpop.permute.xlu0 %1518 }
0x159a   :  { %v1521_v27 = vmul.f32 %v1519_v62, %v1515_v31 }
0x159c   :  { %1523 = vrot.lane.b32.xlu0 %v1521_v27, %s2280_s12 }
0x15a1   :  { %v1635_v29 = vpop.permute.xlu1 %1634 }
0x15a2   :  { %v1637_v32 = vmul.f32 %v1635_v29, %v1631_v30 }
0x15a4   :  { %1639 = vrot.lane.b32.xlu1 %v1637_v32, %s2280_s12 }
0x160e   :  { %v1524_v9 = vpop.permute.xlu0 %1523 }
0x160f   :  { %v2780_v37 = vadd.f32 %v1524_v9, %v1516_v33 }
0x1611   :  { %2259 = vtanh.f32 %v2780_v37 }
0x1616   :  { %v1640_v39 = vpop.permute.xlu1 %1639 }
0x1617   :  { %v1642_v42 = vadd.f32 %v1640_v39, %v1632_v38 }
0x1619   :  { %2261 = vtanh.f32 %v1642_v42 }
0x161b   :  { %v2260_v43 = vpop.eup %2259 }
0x161c   :  { %1529 = vrot.lane.b32.xlu0 %v2260_v43, %s2279_s11 }
0x1623   :  { %v2262_v44 = vpop.eup %2261 }
0x1624   :  { %1645 = vrot.lane.b32.xlu1 %v2262_v44, %s2279_s11 }
0x168e   :  { %v1530_v60 = vpop.permute.xlu0 %1529 }
0x168f   :  { %v2786_v45 = vmul.f32 %v1530_v60, %v1515_v31 }
0x1691   :  { %v1540_v46 = vpack.c.bf16 %v2786_v45, %v2786_v45 }
0x1693   :  { %1542 = vrot.lane.b32.xlu0 %v1540_v46, %s2280_s12 }
0x1696   :  { %v1646_v28 = vpop.permute.xlu1 %1645 }
0x1697   :  { %v1648_v47 = vmul.f32 %v1646_v28, %v1631_v30 }
0x1699   :  { %v1649_v48 = vpack.c.bf16 %v1648_v47, %v1648_v47 }
0x169b   :  { %1651 = vrot.lane.b32.xlu1 %v1649_v48, %s2280_s12 }
0x1705   :  { %v1543_v51 = vpop.permute.xlu0 %1542 }
0x1706   :  { %2116 = vmatmul.mubr.msk.bf16.vlgmr.msra.gmra.mrb[32].mxu0 %vm224_vm9, %v1543_v51 }
0x1707   :  { %2128 = vmatpush3.bf16.msra.mxu0 %v2273_v52  ;;  %2131 = vmatprep.mubr.msk.bf16.mxu0 %vm2277_vm0, %v2276_v6  ;;  %vm1163_vm0 = vcmp.eq.s32.totalorder %v54_v3, 5 }
0x1708   :  { %2129 = vmatprep.subr.bf16.mxu0 %v2276_v6  ;;  %v1164_v49 = vsel %vm1163_vm0, 1, %v2275_v0 }
0x170b   :  { %2130 = vmatpush3.bf16.msra.mxu0 %v2274_v53 }
0x170d   :  { %v1652_v54 = vpop.permute.xlu1 %1651 }
0x1712   :  { %2132 = vmatmul.mubr.msk.bf16.vlgmr.msra.gmra.mrb[32].mxu0 %vm224_vm9, %v1652_v54 }
0x17e5   :  { %v1690_v55 = vpop.f32.mrb[32].mxu0 }
0x17e6   :  { %v2150_v57 = vadd.f32 %v2435_v56, %v1690_v55  ;;  %v2133_v63 = vpop.f32.mrb[33].mxu0  ;;  %v424_v56 = vsel %vm423_vm14, 1, %v2275_v0 }
0x17e7   :  { %v1693_v58 = vpop.f32.mrb[34].mxu0 }
0x17e8   :  { %v1697_v15 = vmul.f32 %v2150_v57, %v2393_v36  ;;  %v2134_v1 = vpop.f32.mrb[35].mxu0 }
0x17ea   :  { %2263 = vtanh.f32 %v1697_v15 }
0x17f4   :  { %v2264_v2 = vpop.eup %2263 }
0x17f5   :  { %v1699_v4 = vmul.f32 %v2264_v2, %v2393_v36 }
0x17f7   :  { %v1700_v61 = vadd.f32 %v1699_v4, %v2396_v41 }
0x17f9   :  { %1703 = vrot.lane.b32.xlu0 %v1700_v61, %s2279_s11  ;;  %v1701_v17 = vmul.f32 %v1700_v61, %v2780_v37 }
0x17fd   :  { %426 = vperm.xlu0 %2189, %v424_v56  }
0x1801   :  { %796 = vperm.xlu0 %2189, %v794_v5  }
0x1805   :  { %1166 = vperm.xlu0 %2189, %v1164_v49  }
0x1809   :  { %1536 = vperm.xlu0 %2189, %v1534_v50  }
0x186b   :  { %v1704_v36 = vpop.permute.xlu0 %1703 }
0x186c   :  { %v1706_v41 = vmul.f32 %v1704_v36, %v1700_v61 }
0x186e   :  { %1708 = vrot.lane.b32.xlu1 %v1706_v41, %s2280_s12 }
0x1872   :  { %611 = vperm.xlu1 %2190, %v609_v8  }
0x1876   :  { %981 = vperm.xlu1 %2190, %v979_v10  }
0x187a   :  { %1351 = vperm.xlu1 %2190, %v1349_v12  }
0x187c   :  { %v427_v0 = vpop.permute.xlu0 %426 }
0x187d   :  { %vm428_vm6 = vcmp.eq.s32.totalorder %v427_v0, 1 }
0x187e   :  { %1721 = vperm.xlu1 %2190, %v1719_v14   ;;  %v429_v13 = vsel %vm428_vm6, %v2469_v40, 0.0 }
0x1880   :  { %v797_v22 = vpop.permute.xlu0 %796 }
0x1881   :  { %vm798_vm10 = vcmp.eq.s32.totalorder %v797_v22, 1 }
0x1884   :  { %v1167_v31 = vpop.permute.xlu0 %1166 }
0x1885   :  { %vm1168_vm12 = vcmp.eq.s32.totalorder %v1167_v31, 1 }
0x1888   :  { %v1537_v62 = vpop.permute.xlu0 %1536 }
0x1889   :  { %vm1538_vm13 = vcmp.eq.s32.totalorder %v1537_v62, 1 }
0x18e0   :  { %v1709_v34 = vpop.permute.xlu1 %1708 }
0x18e1   :  { %v1711_v18 = vadd.f32 %v1709_v34, %v1701_v17 }
0x18e3   :  { %2265 = vtanh.f32 %v1711_v18 }
0x18ed   :  { %v2266_v21 = vpop.eup %2265 }
0x18ee   :  { %1714 = vrot.lane.b32.xlu0 %v2266_v21, %s2279_s11 }
0x18f1   :  { %v612_v11 = vpop.permute.xlu1 %611 }
0x18f2   :  { %vm613_vm7 = vcmp.eq.s32.totalorder %v612_v11, 1 }
0x18f3   :  { %v614_v26 = vsel %vm613_vm7, %v2539_v25, %v429_v13 }
0x18f4   :  { %v799_v6 = vsel %vm798_vm10, %v2589_v35, %v614_v26 }
0x18f5   :  { %v982_v24 = vpop.permute.xlu1 %981 }
0x18f6   :  { %vm983_vm8 = vcmp.eq.s32.totalorder %v982_v24, 1 }
0x18f7   :  { %v984_v30 = vsel %vm983_vm8, %v2639_v23, %v799_v6  ;;  %v1840_v23 = vld [vmem:[%s2846_s2 + $0x2] ss:$0 sm:$0xff] }
0x18f8   :  { %v1169_v27 = vsel %vm1168_vm12, %v2689_v16, %v984_v30 }
0x18f9   :  { %v1352_v7 = vpop.permute.xlu1 %1351 }
0x18fa   :  { %vm1353_vm11 = vcmp.eq.s32.totalorder %v1352_v7, 1 }
0x18fb   :  { %v1354_v29 = vsel %vm1353_vm11, %v2739_v59, %v1169_v27 }
0x18fc   :  { %v1539_v25 = vsel %vm1538_vm13, %v2786_v45, %v1354_v29 }
0x18fd   :  { %v1722_v32 = vpop.permute.xlu1 %1721 }
0x18fe   :  { %vm1723_vm14 = vcmp.eq.s32.totalorder %v1722_v32, 1 }
0x1960   :  { %v1715_v33 = vpop.permute.xlu0 %1714 }
0x1961   :  { %v1717_v40 = vmul.f32 %v1715_v33, %v1700_v61 }
0x1963   :  { %v1724_v9 = vsel %vm1723_vm14, %v1717_v40, %v1539_v25 }
0x1964   :  { %v1725_v37 = vpack.c.bf16 %v1724_v9, %v1724_v9 }
0x1966   :  { %1731 = vrot.lane.b32.xlu1 %v1725_v37, %s2280_s12 }
0x19d8   :  { %v1732_v35 = vpop.permute.xlu1 %1731 }
0x19d9   :  { %2140 = vmatmul.mubr.msk.bf16.vlgmr.msra.gmra.mrb[36].mxu1 %vm224_vm9, %v1732_v35 }
0x1aac   :  { %v1782_v16 = vpop.f32.mrb[36].mxu1 }
0x1aad   :  { %v1783_v59 = vadd.f32 %v1840_v23, %v1782_v16  ;;  %v2141_v38 = vpop.f32.mrb[37].mxu1 }
0x1aae   :  { %v1785_v39 = vpop.f32.mrb[38].mxu1 }
0x1aaf   :  { %1788 = vmax.xlane.f32.xlu0 %v1783_v59  ;;  %v2142_v42 = vpop.f32.mrb[39].mxu1 }
0x1b3c   :  { %v1789_v43 = vpop.xlane.xlu0 %1788 }
0x1b3d   :  { %v1790_v44 = vsub.f32 %v1783_v59, %v1789_v43 }
0x1b3f   :  { %v1791_v60 = vmul.f32 1.442695, %v1790_v44 }
0x1b41   :  { %2267 = vpow2.f32 %v1791_v60 }
0x1b4b   :  { %v2268_v45 = vpop.eup %2267 }
0x1b4c   :  { %1793 = vadd.xlane.f32.xlu1 %v2268_v45 }
0x1bd9   :  { %v1794_v46 = vpop.xlane.xlu1 %1793 }
0x1bda   :  { %2269 = vrcp.f32 %v1794_v46 }
0x1be4   :  { %v2270_v28 = vpop.eup %2269 }
0x1be5   :  { %v1796_v47 = vmul.f32 %v2270_v28, %v2268_v45 }
0x1be7   :  { %1797 = vst [vmem:[%s2847_s3] sm:$0xff] %v1796_v47 }

</bundles_post_ra>
